<compile_context>
chip_gen: v5e
topology: v5e:2x2
jax: 0.10.0
libtpu: 0.0.40
codegen_flags: <defaults>
</compile_context>

<pallas_src>
import functools

import jax
import jax.numpy as jnp
from jax.experimental import pallas as pl
from jax.experimental.pallas import tpu as pltpu


# ----------------------------------------------------------------------------
# Fused Pallas kernel: 5x (Conv1d + folded BN [+ tanh]) per batch element
# ----------------------------------------------------------------------------
def _postnet_fused_kernel(*refs, T, K, n_convs, cdims, use_im2col, bf16_epilogue):
    """One batch element per grid step.

    refs = (x_ref, w_0..w_{n-1}, s_0..s_{n-1}, o_ref, buf_a, buf_b[, stage])

      x_ref : (1, T, cdims[0])           bf16, channels lane-padded
      w_l   : (K * cdims[l], cdims[l+1]) bf16, BN scale folded in, taps on rows
      s_l   : (1, cdims[l+1])            f32, folded shift = b*scale+beta-mean*scale
      o_ref : (1, T, cdims[-1])          f32
      buf_a/buf_b : (T + K - 1, cmax)    bf16 ping-pong activation buffers
      stage : (T, K * cmax)              bf16 im2col staging tile (im2col path only)

    Correctness invariants (do not break):
      * the halo rows [0,pad) and [pad+T, T+2*pad) of buf_a/buf_b are zero and
        are never written by any layer store,
      * layer l only ever reads the first cdims[l] columns of its source buffer
        (stale wider columns from a previous step/layer are never read).
    """
    x_ref = refs[0]
    w_refs = refs[1:1 + n_convs]
    s_refs = refs[1 + n_convs:1 + 2 * n_convs]
    o_ref = refs[1 + 2 * n_convs]
    scratch = refs[2 + 2 * n_convs:]
    if use_im2col:
        buf_a, buf_b, stage = scratch
    else:
        buf_a, buf_b = scratch

    pad = (K - 1) // 2

    # Zero ONLY the halo rows (2*pad rows per buffer).  Cheap enough to redo
    # every grid step; doing it under pl.when(program_id==0) would be unsafe
    # if the parallel batch axis is sharded across TensorCores.
    zrow = jnp.zeros((pad, buf_a.shape[1]), buf_a.dtype)
    for buf in (buf_a, buf_b):
        buf[:pad, :] = zrow
        buf[pad + T:, :] = zrow

    # Load this batch element into the interior rows of buffer A.
    buf_a[pad:pad + T, :cdims[0]] = x_ref[0].astype(buf_a.dtype)

    bufs = (buf_a, buf_b)
    for l in range(n_convs):
        cin, cout = cdims[l], cdims[l + 1]
        src = bufs[l % 2]
        dst = bufs[(l + 1) % 2]

        if use_im2col:
            # Fold the K taps into the contraction dim -> one long-contraction
            # MXU matmul per layer (v5e/v6e MRF-friendly).
            for k in range(K):
                stage[:, k * cin:(k + 1) * cin] = src[k:k + T, :cin]
            y = jnp.dot(stage[:, :K * cin], w_refs[l][...],
                        preferred_element_type=jnp.float32)
        else:
            # v7x path: K accumulated dots straight out of the ping-pong buffer;
            # the MRB accumulates in place, and the big stage scratch is gone.
            y = jnp.dot(src[0:T, :cin], w_refs[l][0:cin, :],
                        preferred_element_type=jnp.float32)
            for k in range(1, K):
                y = y + jnp.dot(src[k:k + T, :cin],
                                w_refs[l][k * cin:(k + 1) * cin, :],
                                preferred_element_type=jnp.float32)

        y = y + s_refs[l][...]                       # folded BN shift (+ bias), f32

        if l < n_convs - 1:
            if bf16_epilogue:
                act = jnp.tanh(y.astype(dst.dtype))  # bf16 EUP tanh (v6e/v7x)
            else:
                act = jnp.tanh(y).astype(dst.dtype)  # f32 tanh (v5e/older)
            dst[pad:pad + T, :cout] = act
        else:
            o_ref[0] = y.astype(o_ref.dtype)         # last layer: linear (no tanh)


# ----------------------------------------------------------------------------
# Host-side parameter folding (done once, outside the per-call path)
# ----------------------------------------------------------------------------
def _round_up(n, m):
    return ((n + m - 1) // m) * m


def prepare_postnet_params(params, kernel_size, eps=1e-5,
                           compute_dtype=jnp.bfloat16):
    """Fold eval-mode BN + conv bias into weights/shifts, pad channels to 128
    lanes, and lay the K taps along the contraction dim."""
    K = kernel_size
    w_list, s_list = [], []
    for p in params:
        cout, cin, _ = p["w"].shape
        cin_p, cout_p = _round_up(cin, 128), _round_up(cout, 128)
        scale = p["gamma"] * jax.lax.rsqrt(p["var"] + eps)
        shift = p["b"] * scale + p["beta"] - p["mean"] * scale
        # PyTorch (Cout, Cin, K) -> (K, Cin, Cout) with BN scale folded in.
        w = jnp.transpose(p["w"] * scale[:, None, None], (2, 1, 0))
        w = jnp.pad(w, ((0, 0), (0, cin_p - cin), (0, cout_p - cout)))
        w_list.append(w.reshape(K * cin_p, cout_p).astype(compute_dtype))
        s_list.append(jnp.pad(shift, (0, cout_p - cout))
                      .reshape(1, cout_p).astype(jnp.float32))
    return tuple(w_list), tuple(s_list)


def _detect_tpu_flavor():
    """Best-effort generation detection to pick per-chip code paths."""
    kind = ""
    try:
        kind = jax.devices()[0].device_kind.lower()
    except Exception:
        pass
    is_old_gen = any(t in kind for t in ("v2", "v3", "v4", "v5"))  # no bf16 VPU/EUP
    is_v7 = "v7" in kind
    use_im2col = not is_v7            # v7x: K accumulated dots (MRB), no stage scratch
    bf16_epilogue = not is_old_gen    # bf16 tanh on v6e/v7x only
    vmem_cap = (48 if is_v7 else 100) * 1024 * 1024
    return use_im2col, bf16_epilogue, vmem_cap


# ----------------------------------------------------------------------------
# Jitted forward
# ----------------------------------------------------------------------------
@functools.partial(
    jax.jit,
    static_argnames=("kernel_size", "use_im2col", "bf16_epilogue", "vmem_cap_bytes"),
)
def postnet_forward(x_nct, w_list, s_list, *, kernel_size,
                    use_im2col=True, bf16_epilogue=True,
                    vmem_cap_bytes=100 * 1024 * 1024):
    """x_nct: (B, n_mel, T) f32 in PyTorch NCW layout.  Returns same layout."""
    B, n_mel, T = x_nct.shape
    K = kernel_size
    pad = (K - 1) // 2
    n_convs = len(w_list)

    cins = tuple(w.shape[0] // K for w in w_list)
    couts = tuple(w.shape[1] for w in w_list)
    cdims = cins + (couts[-1],)
    cmax = max(cdims)
    compute_dtype = w_list[0].dtype
    itemsize = jnp.dtype(compute_dtype).itemsize

    # NCW -> NTC (channels on lanes), lane-pad channels, cast to bf16.
    # TODO(synk): the producer could emit (B, T, C) directly to save this pass.
    x_btc = jnp.transpose(x_nct, (0, 2, 1))
    x_btc = jnp.pad(x_btc, ((0, 0), (0, 0), (0, cdims[0] - n_mel)))
    x_btc = x_btc.astype(compute_dtype)

    kernel = functools.partial(_postnet_fused_kernel, T=T, K=K,
                               n_convs=n_convs, cdims=cdims,
                               use_im2col=use_im2col,
                               bf16_epilogue=bf16_epilogue)

    scratch_shapes = [
        pltpu.VMEM((T + 2 * pad, cmax), compute_dtype),   # ping
        pltpu.VMEM((T + 2 * pad, cmax), compute_dtype),   # pong
    ]
    if use_im2col:
        scratch_shapes.append(pltpu.VMEM((T, K * cmax), compute_dtype))  # im2col stage

    # VMEM budget: actual footprint (double-buffered I/O blocks, weights/shifts,
    # scratch) + 25% headroom, capped per generation (v7x has only 64 MiB).
    w_bytes = sum(w.shape[0] * w.shape[1] * itemsize for w in w_list)
    s_bytes = sum(s.shape[0] * s.shape[1] * 4 for s in s_list)
    in_blk = T * cdims[0] * itemsize
    out_blk = T * cdims[-1] * 4
    scr_bytes = 2 * (T + 2 * pad) * cmax * itemsize
    if use_im2col:
        scr_bytes += T * K * cmax * itemsize
    need = 2 * (in_blk + out_blk) + 2 * (w_bytes + s_bytes) + scr_bytes
    vmem_limit = int(min(vmem_cap_bytes, max(need * 5 // 4, 8 * 1024 * 1024)))

    out_padded = pl.pallas_call(
        kernel,
        out_shape=jax.ShapeDtypeStruct((B, T, cdims[-1]), jnp.float32),
        grid_spec=pltpu.PrefetchScalarGridSpec(
            num_scalar_prefetch=0,
            grid=(B,),
            in_specs=(
                [pl.BlockSpec((1, T, cdims[0]), lambda b: (b, 0, 0))]
                # Weights/shifts: constant block index -> fetched into VMEM once
                # per core and reused across all batch grid steps.
                # (pipeline_mode=pl.Buffered(1) could force single-buffering.)
                + [pl.BlockSpec(w.shape, lambda b: (0, 0)) for w in w_list]
                + [pl.BlockSpec(s.shape, lambda b: (0, 0)) for s in s_list]
            ),
            out_specs=pl.BlockSpec((1, T, cdims[-1]), lambda b: (b, 0, 0)),
            scratch_shapes=scratch_shapes,
        ),
        compiler_params=pltpu.CompilerParams(
            dimension_semantics=("parallel",),
            vmem_limit_bytes=vmem_limit,
        ),
    )(x_btc, *w_list, *s_list)

    return jnp.transpose(out_padded[:, :, :n_mel], (0, 2, 1))


# ----------------------------------------------------------------------------
# Parameter construction (deterministic, synthetic)
# ----------------------------------------------------------------------------
def make_postnet_params(key, n_mel, embed_dim, kernel_size, n_convs):
    """List of per-layer dicts mimicking Conv1d + BatchNorm1d (eval) params."""
    layers = []
    dims = [n_mel] + [embed_dim] * (n_convs - 1) + [n_mel]
    for i in range(n_convs):
        cin, cout = dims[i], dims[i + 1]
        key, k_w, k_b, k_g, k_be, k_m, k_v = jax.random.split(key, 7)
        limit = (6.0 / (cin * kernel_size + cout * kernel_size)) ** 0.5
        w = jax.random.uniform(k_w, (cout, cin, kernel_size), jnp.float32, -limit, limit)
        b = jax.random.uniform(k_b, (cout,), jnp.float32, -0.1, 0.1)
        gamma = 1.0 + 0.1 * jax.random.normal(k_g, (cout,), jnp.float32)
        beta = 0.1 * jax.random.normal(k_be, (cout,), jnp.float32)
        running_mean = 0.1 * jax.random.normal(k_m, (cout,), jnp.float32)
        running_var = jnp.abs(1.0 + 0.1 * jax.random.normal(k_v, (cout,), jnp.float32))
        layers.append(
            dict(w=w, b=b, gamma=gamma, beta=beta, mean=running_mean, var=running_var)
        )
    return layers


# ----------------------------------------------------------------------------
# Pure-JAX f32 reference (true module semantics) for a sanity check
# ----------------------------------------------------------------------------
def postnet_reference(x_nct, params, kernel_size):
    eps = 1e-5
    n_convs = len(params)
    x = x_nct
    for i, p in enumerate(params):
        y = jax.lax.conv_general_dilated(
            x, p["w"], window_strides=(1,),
            padding=[((kernel_size - 1) // 2,) * 2],
            dimension_numbers=("NCH", "OIH", "NCH"),
        ) + p["b"][None, :, None]
        scale = p["gamma"] / jnp.sqrt(p["var"] + eps)
        y = (y - p["mean"][None, :, None]) * scale[None, :, None] + p["beta"][None, :, None]
        if i != n_convs - 1:
            y = jnp.tanh(y)
        x = y
    return x


if __name__ == "__main__":
    # Small synthetic hparams (PyTorch defaults would be 80 / 512 / 5 / 5).
    n_mel_channels = 16
    postnet_embedding_dim = 32
    postnet_kernel_size = 5
    postnet_n_convolutions = 5
    batch, T = 2, 24

    key = jax.random.PRNGKey(0)
    key, k_x = jax.random.split(key)
    x = jax.random.normal(k_x, (batch, n_mel_channels, T), jnp.float32)  # NCW

    params = make_postnet_params(
        key, n_mel_channels, postnet_embedding_dim, postnet_kernel_size,
        postnet_n_convolutions,
    )

    # One-time weight folding / padding (hoisted out of the per-call path).
    w_list, s_list = prepare_postnet_params(params, postnet_kernel_size)

    # Per-generation code-path selection (v7x: no im2col stage; v6e/v7x: bf16 tanh).
    use_im2col, bf16_epilogue, vmem_cap = _detect_tpu_flavor()

    out = postnet_forward(x, w_list, s_list, kernel_size=postnet_kernel_size,
                          use_im2col=use_im2col, bf16_epilogue=bf16_epilogue,
                          vmem_cap_bytes=vmem_cap)
    out = jax.block_until_ready(out)

    ref = postnet_reference(x, params, postnet_kernel_size)
    assert out.shape == (batch, n_mel_channels, T)
    # bf16 matmul operands / activations vs. pure-f32 reference: loosened tolerance.
    err = float(jnp.max(jnp.abs(out - ref)))
    assert err < 5e-2, f"mismatch vs reference: max abs err = {err}"

    print("KERNEL_OK")
</pallas_src>

<mosaic_0001>
module attributes {stable_mosaic.version = 11 : i64} {
  func.func @_postnet_fused_kernel(%arg0: i32, %arg1: memref<1x24x128xbf16, #tpu.memory_space<vmem>>, %arg2: memref<640x128xbf16, #tpu.memory_space<vmem>>, %arg3: memref<640x128xbf16, #tpu.memory_space<vmem>>, %arg4: memref<640x128xbf16, #tpu.memory_space<vmem>>, %arg5: memref<640x128xbf16, #tpu.memory_space<vmem>>, %arg6: memref<640x128xbf16, #tpu.memory_space<vmem>>, %arg7: memref<1x128xf32, #tpu.memory_space<vmem>>, %arg8: memref<1x128xf32, #tpu.memory_space<vmem>>, %arg9: memref<1x128xf32, #tpu.memory_space<vmem>>, %arg10: memref<1x128xf32, #tpu.memory_space<vmem>>, %arg11: memref<1x128xf32, #tpu.memory_space<vmem>>, %arg12: memref<1x24x128xf32, #tpu.memory_space<vmem>>, %arg13: memref<28x128xbf16, #tpu.memory_space<vmem>>, %arg14: memref<28x128xbf16, #tpu.memory_space<vmem>>, %arg15: memref<24x640xbf16, #tpu.memory_space<vmem>>) attributes {dimension_semantics = [#tpu.dimension_semantics<parallel>], iteration_bounds = array<i64: 2>, scalar_prefetch = 0 : i64, scratch_operands = 3 : i64, tpu.core_type = #tpu.core_type<tc>, window_params = [{transform_indices = @transform_0, window_bounds = array<i64: 1, 24, 128>}, {pipeline_mode = #tpu.pipeline_mode<synchronous>, transform_indices = @transform_1, window_bounds = array<i64: 640, 128>}, {pipeline_mode = #tpu.pipeline_mode<synchronous>, transform_indices = @transform_2, window_bounds = array<i64: 640, 128>}, {pipeline_mode = #tpu.pipeline_mode<synchronous>, transform_indices = @transform_3, window_bounds = array<i64: 640, 128>}, {pipeline_mode = #tpu.pipeline_mode<synchronous>, transform_indices = @transform_4, window_bounds = array<i64: 640, 128>}, {pipeline_mode = #tpu.pipeline_mode<synchronous>, transform_indices = @transform_5, window_bounds = array<i64: 640, 128>}, {pipeline_mode = #tpu.pipeline_mode<synchronous>, transform_indices = @transform_6, window_bounds = array<i64: 1, 128>}, {pipeline_mode = #tpu.pipeline_mode<synchronous>, transform_indices = @transform_7, window_bounds = array<i64: 1, 128>}, {pipeline_mode = #tpu.pipeline_mode<synchronous>, transform_indices = @transform_8, window_bounds = array<i64: 1, 128>}, {pipeline_mode = #tpu.pipeline_mode<synchronous>, transform_indices = @transform_9, window_bounds = array<i64: 1, 128>}, {pipeline_mode = #tpu.pipeline_mode<synchronous>, transform_indices = @transform_10, window_bounds = array<i64: 1, 128>}, {transform_indices = @transform_11, window_bounds = array<i64: 1, 24, 128>}]} {
    %cst = arith.constant 0.000000e+00 : bf16
    %0 = vector.broadcast %cst : bf16 to vector<2x128xbf16>
    %c0 = arith.constant 0 : index
    %c0_0 = arith.constant 0 : index
    %1 = vector.load %arg13[%c0, %c0_0] : memref<28x128xbf16, #tpu.memory_space<vmem>>, vector<2x128xbf16>
    tpu.vector_store %arg13[%c0, %c0_0], %0 {strides = array<i32>} : memref<28x128xbf16, #tpu.memory_space<vmem>>, vector<2x128xbf16>,
    %c26 = arith.constant 26 : index
    %c0_1 = arith.constant 0 : index
    %2 = vector.load %arg13[%c26, %c0_1] : memref<28x128xbf16, #tpu.memory_space<vmem>>, vector<2x128xbf16>
    tpu.vector_store %arg13[%c26, %c0_1], %0 {strides = array<i32>} : memref<28x128xbf16, #tpu.memory_space<vmem>>, vector<2x128xbf16>,
    %c0_2 = arith.constant 0 : index
    %c0_3 = arith.constant 0 : index
    %3 = vector.load %arg14[%c0_2, %c0_3] : memref<28x128xbf16, #tpu.memory_space<vmem>>, vector<2x128xbf16>
    tpu.vector_store %arg14[%c0_2, %c0_3], %0 {strides = array<i32>} : memref<28x128xbf16, #tpu.memory_space<vmem>>, vector<2x128xbf16>,
    %c26_4 = arith.constant 26 : index
    %c0_5 = arith.constant 0 : index
    %4 = vector.load %arg14[%c26_4, %c0_5] : memref<28x128xbf16, #tpu.memory_space<vmem>>, vector<2x128xbf16>
    tpu.vector_store %arg14[%c26_4, %c0_5], %0 {strides = array<i32>} : memref<28x128xbf16, #tpu.memory_space<vmem>>, vector<2x128xbf16>,
    %c0_6 = arith.constant 0 : index
    %c0_7 = arith.constant 0 : index
    %c0_8 = arith.constant 0 : index
    %5 = vector.load %arg1[%c0_6, %c0_7, %c0_8] : memref<1x24x128xbf16, #tpu.memory_space<vmem>>, vector<1x24x128xbf16>
    %6 = vector.shape_cast %5 : vector<1x24x128xbf16> to vector<24x128xbf16>
    %c2 = arith.constant 2 : index
    %c0_9 = arith.constant 0 : index
    %7 = vector.load %arg13[%c2, %c0_9] : memref<28x128xbf16, #tpu.memory_space<vmem>>, vector<24x128xbf16>
    tpu.vector_store %arg13[%c2, %c0_9], %6 {strides = array<i32>} : memref<28x128xbf16, #tpu.memory_space<vmem>>, vector<24x128xbf16>,
    %c0_10 = arith.constant 0 : index
    %c0_11 = arith.constant 0 : index
    %8 = vector.load %arg13[%c0_10, %c0_11] : memref<28x128xbf16, #tpu.memory_space<vmem>>, vector<24x128xbf16>
    %c0_12 = arith.constant 0 : index
    %c0_13 = arith.constant 0 : index
    %9 = vector.load %arg15[%c0_12, %c0_13] : memref<24x640xbf16, #tpu.memory_space<vmem>>, vector<24x128xbf16>
    tpu.vector_store %arg15[%c0_12, %c0_13], %8 {strides = array<i32>} : memref<24x640xbf16, #tpu.memory_space<vmem>>, vector<24x128xbf16>,
    %c1 = arith.constant 1 : index
    %c0_14 = arith.constant 0 : index
    %10 = vector.load %arg13[%c1, %c0_14] : memref<28x128xbf16, #tpu.memory_space<vmem>>, vector<24x128xbf16>
    %c0_15 = arith.constant 0 : index
    %c128 = arith.constant 128 : index
    %11 = vector.load %arg15[%c0_15, %c128] : memref<24x640xbf16, #tpu.memory_space<vmem>>, vector<24x128xbf16>
    tpu.vector_store %arg15[%c0_15, %c128], %10 {strides = array<i32>} : memref<24x640xbf16, #tpu.memory_space<vmem>>, vector<24x128xbf16>,
    %c2_16 = arith.constant 2 : index
    %c0_17 = arith.constant 0 : index
    %12 = vector.load %arg13[%c2_16, %c0_17] : memref<28x128xbf16, #tpu.memory_space<vmem>>, vector<24x128xbf16>
    %c0_18 = arith.constant 0 : index
    %c256 = arith.constant 256 : index
    %13 = vector.load %arg15[%c0_18, %c256] : memref<24x640xbf16, #tpu.memory_space<vmem>>, vector<24x128xbf16>
    tpu.vector_store %arg15[%c0_18, %c256], %12 {strides = array<i32>} : memref<24x640xbf16, #tpu.memory_space<vmem>>, vector<24x128xbf16>,
    %c3 = arith.constant 3 : index
    %c0_19 = arith.constant 0 : index
    %14 = vector.load %arg13[%c3, %c0_19] : memref<28x128xbf16, #tpu.memory_space<vmem>>, vector<24x128xbf16>
    %c0_20 = arith.constant 0 : index
    %c384 = arith.constant 384 : index
    %15 = vector.load %arg15[%c0_20, %c384] : memref<24x640xbf16, #tpu.memory_space<vmem>>, vector<24x128xbf16>
    tpu.vector_store %arg15[%c0_20, %c384], %14 {strides = array<i32>} : memref<24x640xbf16, #tpu.memory_space<vmem>>, vector<24x128xbf16>,
    %c4 = arith.constant 4 : index
    %c0_21 = arith.constant 0 : index
    %16 = vector.load %arg13[%c4, %c0_21] : memref<28x128xbf16, #tpu.memory_space<vmem>>, vector<24x128xbf16>
    %c0_22 = arith.constant 0 : index
    %c512 = arith.constant 512 : index
    %17 = vector.load %arg15[%c0_22, %c512] : memref<24x640xbf16, #tpu.memory_space<vmem>>, vector<24x128xbf16>
    tpu.vector_store %arg15[%c0_22, %c512], %16 {strides = array<i32>} : memref<24x640xbf16, #tpu.memory_space<vmem>>, vector<24x128xbf16>,
    %c0_23 = arith.constant 0 : index
    %c0_24 = arith.constant 0 : index
    %18 = vector.load %arg15[%c0_23, %c0_24] : memref<24x640xbf16, #tpu.memory_space<vmem>>, vector<24x640xbf16>
    %c0_25 = arith.constant 0 : index
    %c0_26 = arith.constant 0 : index
    %19 = vector.load %arg2[%c0_25, %c0_26] : memref<640x128xbf16, #tpu.memory_space<vmem>>, vector<640x128xbf16>
    %cst_27 = arith.constant dense<0.000000e+00> : vector<24x128xf32>
    %20 = tpu.matmul %18, %19, %cst_27 {dimension_numbers = #tpu.dot_dimension_numbers<[1], [0], [0], [1], [0, 0, 1, 1], [], []>} : vector<24x640xbf16>, vector<640x128xbf16>, vector<24x128xf32> -> vector<24x128xf32>
    %c0_28 = arith.constant 0 : index
    %c0_29 = arith.constant 0 : index
    %21 = vector.load %arg7[%c0_28, %c0_29] : memref<1x128xf32, #tpu.memory_space<vmem>>, vector<1x128xf32>
    %22 = vector.broadcast %21 : vector<1x128xf32> to vector<24x128xf32>
    %23 = arith.addf %20, %22 : vector<24x128xf32>
    %24 = arith.truncf %23 : vector<24x128xf32> to vector<24x128xbf16>
    %25 = math.tanh %24 : vector<24x128xbf16>
    %c2_30 = arith.constant 2 : index
    %c0_31 = arith.constant 0 : index
    %26 = vector.load %arg14[%c2_30, %c0_31] : memref<28x128xbf16, #tpu.memory_space<vmem>>, vector<24x128xbf16>
    tpu.vector_store %arg14[%c2_30, %c0_31], %25 {strides = array<i32>} : memref<28x128xbf16, #tpu.memory_space<vmem>>, vector<24x128xbf16>,
    %c0_32 = arith.constant 0 : index
    %c0_33 = arith.constant 0 : index
    %27 = vector.load %arg14[%c0_32, %c0_33] : memref<28x128xbf16, #tpu.memory_space<vmem>>, vector<24x128xbf16>
    %c0_34 = arith.constant 0 : index
    %c0_35 = arith.constant 0 : index
    %28 = vector.load %arg15[%c0_34, %c0_35] : memref<24x640xbf16, #tpu.memory_space<vmem>>, vector<24x128xbf16>
    tpu.vector_store %arg15[%c0_34, %c0_35], %27 {strides = array<i32>} : memref<24x640xbf16, #tpu.memory_space<vmem>>, vector<24x128xbf16>,
    %c1_36 = arith.constant 1 : index
    %c0_37 = arith.constant 0 : index
    %29 = vector.load %arg14[%c1_36, %c0_37] : memref<28x128xbf16, #tpu.memory_space<vmem>>, vector<24x128xbf16>
    %c0_38 = arith.constant 0 : index
    %c128_39 = arith.constant 128 : index
    %30 = vector.load %arg15[%c0_38, %c128_39] : memref<24x640xbf16, #tpu.memory_space<vmem>>, vector<24x128xbf16>
    tpu.vector_store %arg15[%c0_38, %c128_39], %29 {strides = array<i32>} : memref<24x640xbf16, #tpu.memory_space<vmem>>, vector<24x128xbf16>,
    %c2_40 = arith.constant 2 : index
    %c0_41 = arith.constant 0 : index
    %31 = vector.load %arg14[%c2_40, %c0_41] : memref<28x128xbf16, #tpu.memory_space<vmem>>, vector<24x128xbf16>
    %c0_42 = arith.constant 0 : index
    %c256_43 = arith.constant 256 : index
    %32 = vector.load %arg15[%c0_42, %c256_43] : memref<24x640xbf16, #tpu.memory_space<vmem>>, vector<24x128xbf16>
    tpu.vector_store %arg15[%c0_42, %c256_43], %31 {strides = array<i32>} : memref<24x640xbf16, #tpu.memory_space<vmem>>, vector<24x128xbf16>,
    %c3_44 = arith.constant 3 : index
    %c0_45 = arith.constant 0 : index
    %33 = vector.load %arg14[%c3_44, %c0_45] : memref<28x128xbf16, #tpu.memory_space<vmem>>, vector<24x128xbf16>
    %c0_46 = arith.constant 0 : index
    %c384_47 = arith.constant 384 : index
    %34 = vector.load %arg15[%c0_46, %c384_47] : memref<24x640xbf16, #tpu.memory_space<vmem>>, vector<24x128xbf16>
    tpu.vector_store %arg15[%c0_46, %c384_47], %33 {strides = array<i32>} : memref<24x640xbf16, #tpu.memory_space<vmem>>, vector<24x128xbf16>,
    %c4_48 = arith.constant 4 : index
    %c0_49 = arith.constant 0 : index
    %35 = vector.load %arg14[%c4_48, %c0_49] : memref<28x128xbf16, #tpu.memory_space<vmem>>, vector<24x128xbf16>
    %c0_50 = arith.constant 0 : index
    %c512_51 = arith.constant 512 : index
    %36 = vector.load %arg15[%c0_50, %c512_51] : memref<24x640xbf16, #tpu.memory_space<vmem>>, vector<24x128xbf16>
    tpu.vector_store %arg15[%c0_50, %c512_51], %35 {strides = array<i32>} : memref<24x640xbf16, #tpu.memory_space<vmem>>, vector<24x128xbf16>,
    %c0_52 = arith.constant 0 : index
    %c0_53 = arith.constant 0 : index
    %37 = vector.load %arg15[%c0_52, %c0_53] : memref<24x640xbf16, #tpu.memory_space<vmem>>, vector<24x640xbf16>
    %c0_54 = arith.constant 0 : index
    %c0_55 = arith.constant 0 : index
    %38 = vector.load %arg3[%c0_54, %c0_55] : memref<640x128xbf16, #tpu.memory_space<vmem>>, vector<640x128xbf16>
    %cst_56 = arith.constant dense<0.000000e+00> : vector<24x128xf32>
    %39 = tpu.matmul %37, %38, %cst_56 {dimension_numbers = #tpu.dot_dimension_numbers<[1], [0], [0], [1], [0, 0, 1, 1], [], []>} : vector<24x640xbf16>, vector<640x128xbf16>, vector<24x128xf32> -> vector<24x128xf32>
    %c0_57 = arith.constant 0 : index
    %c0_58 = arith.constant 0 : index
    %40 = vector.load %arg8[%c0_57, %c0_58] : memref<1x128xf32, #tpu.memory_space<vmem>>, vector<1x128xf32>
    %41 = vector.broadcast %40 : vector<1x128xf32> to vector<24x128xf32>
    %42 = arith.addf %39, %41 : vector<24x128xf32>
    %43 = arith.truncf %42 : vector<24x128xf32> to vector<24x128xbf16>
    %44 = math.tanh %43 : vector<24x128xbf16>
    %c2_59 = arith.constant 2 : index
    %c0_60 = arith.constant 0 : index
    %45 = vector.load %arg13[%c2_59, %c0_60] : memref<28x128xbf16, #tpu.memory_space<vmem>>, vector<24x128xbf16>
    tpu.vector_store %arg13[%c2_59, %c0_60], %44 {strides = array<i32>} : memref<28x128xbf16, #tpu.memory_space<vmem>>, vector<24x128xbf16>,
    %c0_61 = arith.constant 0 : index
    %c0_62 = arith.constant 0 : index
    %46 = vector.load %arg13[%c0_61, %c0_62] : memref<28x128xbf16, #tpu.memory_space<vmem>>, vector<24x128xbf16>
    %c0_63 = arith.constant 0 : index
    %c0_64 = arith.constant 0 : index
    %47 = vector.load %arg15[%c0_63, %c0_64] : memref<24x640xbf16, #tpu.memory_space<vmem>>, vector<24x128xbf16>
    tpu.vector_store %arg15[%c0_63, %c0_64], %46 {strides = array<i32>} : memref<24x640xbf16, #tpu.memory_space<vmem>>, vector<24x128xbf16>,
    %c1_65 = arith.constant 1 : index
    %c0_66 = arith.constant 0 : index
    %48 = vector.load %arg13[%c1_65, %c0_66] : memref<28x128xbf16, #tpu.memory_space<vmem>>, vector<24x128xbf16>
    %c0_67 = arith.constant 0 : index
    %c128_68 = arith.constant 128 : index
    %49 = vector.load %arg15[%c0_67, %c128_68] : memref<24x640xbf16, #tpu.memory_space<vmem>>, vector<24x128xbf16>
    tpu.vector_store %arg15[%c0_67, %c128_68], %48 {strides = array<i32>} : memref<24x640xbf16, #tpu.memory_space<vmem>>, vector<24x128xbf16>,
    %c2_69 = arith.constant 2 : index
    %c0_70 = arith.constant 0 : index
    %50 = vector.load %arg13[%c2_69, %c0_70] : memref<28x128xbf16, #tpu.memory_space<vmem>>, vector<24x128xbf16>
    %c0_71 = arith.constant 0 : index
    %c256_72 = arith.constant 256 : index
    %51 = vector.load %arg15[%c0_71, %c256_72] : memref<24x640xbf16, #tpu.memory_space<vmem>>, vector<24x128xbf16>
    tpu.vector_store %arg15[%c0_71, %c256_72], %50 {strides = array<i32>} : memref<24x640xbf16, #tpu.memory_space<vmem>>, vector<24x128xbf16>,
    %c3_73 = arith.constant 3 : index
    %c0_74 = arith.constant 0 : index
    %52 = vector.load %arg13[%c3_73, %c0_74] : memref<28x128xbf16, #tpu.memory_space<vmem>>, vector<24x128xbf16>
    %c0_75 = arith.constant 0 : index
    %c384_76 = arith.constant 384 : index
    %53 = vector.load %arg15[%c0_75, %c384_76] : memref<24x640xbf16, #tpu.memory_space<vmem>>, vector<24x128xbf16>
    tpu.vector_store %arg15[%c0_75, %c384_76], %52 {strides = array<i32>} : memref<24x640xbf16, #tpu.memory_space<vmem>>, vector<24x128xbf16>,
    %c4_77 = arith.constant 4 : index
    %c0_78 = arith.constant 0 : index
    %54 = vector.load %arg13[%c4_77, %c0_78] : memref<28x128xbf16, #tpu.memory_space<vmem>>, vector<24x128xbf16>
    %c0_79 = arith.constant 0 : index
    %c512_80 = arith.constant 512 : index
    %55 = vector.load %arg15[%c0_79, %c512_80] : memref<24x640xbf16, #tpu.memory_space<vmem>>, vector<24x128xbf16>
    tpu.vector_store %arg15[%c0_79, %c512_80], %54 {strides = array<i32>} : memref<24x640xbf16, #tpu.memory_space<vmem>>, vector<24x128xbf16>,
    %c0_81 = arith.constant 0 : index
    %c0_82 = arith.constant 0 : index
    %56 = vector.load %arg15[%c0_81, %c0_82] : memref<24x640xbf16, #tpu.memory_space<vmem>>, vector<24x640xbf16>
    %c0_83 = arith.constant 0 : index
    %c0_84 = arith.constant 0 : index
    %57 = vector.load %arg4[%c0_83, %c0_84] : memref<640x128xbf16, #tpu.memory_space<vmem>>, vector<640x128xbf16>
    %cst_85 = arith.constant dense<0.000000e+00> : vector<24x128xf32>
    %58 = tpu.matmul %56, %57, %cst_85 {dimension_numbers = #tpu.dot_dimension_numbers<[1], [0], [0], [1], [0, 0, 1, 1], [], []>} : vector<24x640xbf16>, vector<640x128xbf16>, vector<24x128xf32> -> vector<24x128xf32>
    %c0_86 = arith.constant 0 : index
    %c0_87 = arith.constant 0 : index
    %59 = vector.load %arg9[%c0_86, %c0_87] : memref<1x128xf32, #tpu.memory_space<vmem>>, vector<1x128xf32>
    %60 = vector.broadcast %59 : vector<1x128xf32> to vector<24x128xf32>
    %61 = arith.addf %58, %60 : vector<24x128xf32>
    %62 = arith.truncf %61 : vector<24x128xf32> to vector<24x128xbf16>
    %63 = math.tanh %62 : vector<24x128xbf16>
    %c2_88 = arith.constant 2 : index
    %c0_89 = arith.constant 0 : index
    %64 = vector.load %arg14[%c2_88, %c0_89] : memref<28x128xbf16, #tpu.memory_space<vmem>>, vector<24x128xbf16>
    tpu.vector_store %arg14[%c2_88, %c0_89], %63 {strides = array<i32>} : memref<28x128xbf16, #tpu.memory_space<vmem>>, vector<24x128xbf16>,
    %c0_90 = arith.constant 0 : index
    %c0_91 = arith.constant 0 : index
    %65 = vector.load %arg14[%c0_90, %c0_91] : memref<28x128xbf16, #tpu.memory_space<vmem>>, vector<24x128xbf16>
    %c0_92 = arith.constant 0 : index
    %c0_93 = arith.constant 0 : index
    %66 = vector.load %arg15[%c0_92, %c0_93] : memref<24x640xbf16, #tpu.memory_space<vmem>>, vector<24x128xbf16>
    tpu.vector_store %arg15[%c0_92, %c0_93], %65 {strides = array<i32>} : memref<24x640xbf16, #tpu.memory_space<vmem>>, vector<24x128xbf16>,
    %c1_94 = arith.constant 1 : index
    %c0_95 = arith.constant 0 : index
    %67 = vector.load %arg14[%c1_94, %c0_95] : memref<28x128xbf16, #tpu.memory_space<vmem>>, vector<24x128xbf16>
    %c0_96 = arith.constant 0 : index
    %c128_97 = arith.constant 128 : index
    %68 = vector.load %arg15[%c0_96, %c128_97] : memref<24x640xbf16, #tpu.memory_space<vmem>>, vector<24x128xbf16>
    tpu.vector_store %arg15[%c0_96, %c128_97], %67 {strides = array<i32>} : memref<24x640xbf16, #tpu.memory_space<vmem>>, vector<24x128xbf16>,
    %c2_98 = arith.constant 2 : index
    %c0_99 = arith.constant 0 : index
    %69 = vector.load %arg14[%c2_98, %c0_99] : memref<28x128xbf16, #tpu.memory_space<vmem>>, vector<24x128xbf16>
    %c0_100 = arith.constant 0 : index
    %c256_101 = arith.constant 256 : index
    %70 = vector.load %arg15[%c0_100, %c256_101] : memref<24x640xbf16, #tpu.memory_space<vmem>>, vector<24x128xbf16>
    tpu.vector_store %arg15[%c0_100, %c256_101], %69 {strides = array<i32>} : memref<24x640xbf16, #tpu.memory_space<vmem>>, vector<24x128xbf16>,
    %c3_102 = arith.constant 3 : index
    %c0_103 = arith.constant 0 : index
    %71 = vector.load %arg14[%c3_102, %c0_103] : memref<28x128xbf16, #tpu.memory_space<vmem>>, vector<24x128xbf16>
    %c0_104 = arith.constant 0 : index
    %c384_105 = arith.constant 384 : index
    %72 = vector.load %arg15[%c0_104, %c384_105] : memref<24x640xbf16, #tpu.memory_space<vmem>>, vector<24x128xbf16>
    tpu.vector_store %arg15[%c0_104, %c384_105], %71 {strides = array<i32>} : memref<24x640xbf16, #tpu.memory_space<vmem>>, vector<24x128xbf16>,
    %c4_106 = arith.constant 4 : index
    %c0_107 = arith.constant 0 : index
    %73 = vector.load %arg14[%c4_106, %c0_107] : memref<28x128xbf16, #tpu.memory_space<vmem>>, vector<24x128xbf16>
    %c0_108 = arith.constant 0 : index
    %c512_109 = arith.constant 512 : index
    %74 = vector.load %arg15[%c0_108, %c512_109] : memref<24x640xbf16, #tpu.memory_space<vmem>>, vector<24x128xbf16>
    tpu.vector_store %arg15[%c0_108, %c512_109], %73 {strides = array<i32>} : memref<24x640xbf16, #tpu.memory_space<vmem>>, vector<24x128xbf16>,
    %c0_110 = arith.constant 0 : index
    %c0_111 = arith.constant 0 : index
    %75 = vector.load %arg15[%c0_110, %c0_111] : memref<24x640xbf16, #tpu.memory_space<vmem>>, vector<24x640xbf16>
    %c0_112 = arith.constant 0 : index
    %c0_113 = arith.constant 0 : index
    %76 = vector.load %arg5[%c0_112, %c0_113] : memref<640x128xbf16, #tpu.memory_space<vmem>>, vector<640x128xbf16>
    %cst_114 = arith.constant dense<0.000000e+00> : vector<24x128xf32>
    %77 = tpu.matmul %75, %76, %cst_114 {dimension_numbers = #tpu.dot_dimension_numbers<[1], [0], [0], [1], [0, 0, 1, 1], [], []>} : vector<24x640xbf16>, vector<640x128xbf16>, vector<24x128xf32> -> vector<24x128xf32>
    %c0_115 = arith.constant 0 : index
    %c0_116 = arith.constant 0 : index
    %78 = vector.load %arg10[%c0_115, %c0_116] : memref<1x128xf32, #tpu.memory_space<vmem>>, vector<1x128xf32>
    %79 = vector.broadcast %78 : vector<1x128xf32> to vector<24x128xf32>
    %80 = arith.addf %77, %79 : vector<24x128xf32>
    %81 = arith.truncf %80 : vector<24x128xf32> to vector<24x128xbf16>
    %82 = math.tanh %81 : vector<24x128xbf16>
    %c2_117 = arith.constant 2 : index
    %c0_118 = arith.constant 0 : index
    %83 = vector.load %arg13[%c2_117, %c0_118] : memref<28x128xbf16, #tpu.memory_space<vmem>>, vector<24x128xbf16>
    tpu.vector_store %arg13[%c2_117, %c0_118], %82 {strides = array<i32>} : memref<28x128xbf16, #tpu.memory_space<vmem>>, vector<24x128xbf16>,
    %c0_119 = arith.constant 0 : index
    %c0_120 = arith.constant 0 : index
    %84 = vector.load %arg13[%c0_119, %c0_120] : memref<28x128xbf16, #tpu.memory_space<vmem>>, vector<24x128xbf16>
    %c0_121 = arith.constant 0 : index
    %c0_122 = arith.constant 0 : index
    %85 = vector.load %arg15[%c0_121, %c0_122] : memref<24x640xbf16, #tpu.memory_space<vmem>>, vector<24x128xbf16>
    tpu.vector_store %arg15[%c0_121, %c0_122], %84 {strides = array<i32>} : memref<24x640xbf16, #tpu.memory_space<vmem>>, vector<24x128xbf16>,
    %c1_123 = arith.constant 1 : index
    %c0_124 = arith.constant 0 : index
    %86 = vector.load %arg13[%c1_123, %c0_124] : memref<28x128xbf16, #tpu.memory_space<vmem>>, vector<24x128xbf16>
    %c0_125 = arith.constant 0 : index
    %c128_126 = arith.constant 128 : index
    %87 = vector.load %arg15[%c0_125, %c128_126] : memref<24x640xbf16, #tpu.memory_space<vmem>>, vector<24x128xbf16>
    tpu.vector_store %arg15[%c0_125, %c128_126], %86 {strides = array<i32>} : memref<24x640xbf16, #tpu.memory_space<vmem>>, vector<24x128xbf16>,
    %c2_127 = arith.constant 2 : index
    %c0_128 = arith.constant 0 : index
    %88 = vector.load %arg13[%c2_127, %c0_128] : memref<28x128xbf16, #tpu.memory_space<vmem>>, vector<24x128xbf16>
    %c0_129 = arith.constant 0 : index
    %c256_130 = arith.constant 256 : index
    %89 = vector.load %arg15[%c0_129, %c256_130] : memref<24x640xbf16, #tpu.memory_space<vmem>>, vector<24x128xbf16>
    tpu.vector_store %arg15[%c0_129, %c256_130], %88 {strides = array<i32>} : memref<24x640xbf16, #tpu.memory_space<vmem>>, vector<24x128xbf16>,
    %c3_131 = arith.constant 3 : index
    %c0_132 = arith.constant 0 : index
    %90 = vector.load %arg13[%c3_131, %c0_132] : memref<28x128xbf16, #tpu.memory_space<vmem>>, vector<24x128xbf16>
    %c0_133 = arith.constant 0 : index
    %c384_134 = arith.constant 384 : index
    %91 = vector.load %arg15[%c0_133, %c384_134] : memref<24x640xbf16, #tpu.memory_space<vmem>>, vector<24x128xbf16>
    tpu.vector_store %arg15[%c0_133, %c384_134], %90 {strides = array<i32>} : memref<24x640xbf16, #tpu.memory_space<vmem>>, vector<24x128xbf16>,
    %c4_135 = arith.constant 4 : index
    %c0_136 = arith.constant 0 : index
    %92 = vector.load %arg13[%c4_135, %c0_136] : memref<28x128xbf16, #tpu.memory_space<vmem>>, vector<24x128xbf16>
    %c0_137 = arith.constant 0 : index
    %c512_138 = arith.constant 512 : index
    %93 = vector.load %arg15[%c0_137, %c512_138] : memref<24x640xbf16, #tpu.memory_space<vmem>>, vector<24x128xbf16>
    tpu.vector_store %arg15[%c0_137, %c512_138], %92 {strides = array<i32>} : memref<24x640xbf16, #tpu.memory_space<vmem>>, vector<24x128xbf16>,
    %c0_139 = arith.constant 0 : index
    %c0_140 = arith.constant 0 : index
    %94 = vector.load %arg15[%c0_139, %c0_140] : memref<24x640xbf16, #tpu.memory_space<vmem>>, vector<24x640xbf16>
    %c0_141 = arith.constant 0 : index
    %c0_142 = arith.constant 0 : index
    %95 = vector.load %arg6[%c0_141, %c0_142] : memref<640x128xbf16, #tpu.memory_space<vmem>>, vector<640x128xbf16>
    %cst_143 = arith.constant dense<0.000000e+00> : vector<24x128xf32>
    %96 = tpu.matmul %94, %95, %cst_143 {dimension_numbers = #tpu.dot_dimension_numbers<[1], [0], [0], [1], [0, 0, 1, 1], [], []>} : vector<24x640xbf16>, vector<640x128xbf16>, vector<24x128xf32> -> vector<24x128xf32>
    %c0_144 = arith.constant 0 : index
    %c0_145 = arith.constant 0 : index
    %97 = vector.load %arg11[%c0_144, %c0_145] : memref<1x128xf32, #tpu.memory_space<vmem>>, vector<1x128xf32>
    %98 = vector.broadcast %97 : vector<1x128xf32> to vector<24x128xf32>
    %99 = arith.addf %96, %98 : vector<24x128xf32>
    %c0_146 = arith.constant 0 : index
    %c0_147 = arith.constant 0 : index
    %c0_148 = arith.constant 0 : index
    %100 = vector.load %arg12[%c0_146, %c0_147, %c0_148] : memref<1x24x128xf32, #tpu.memory_space<vmem>>, vector<1x24x128xf32>
    %101 = vector.shape_cast %100 : vector<1x24x128xf32> to vector<24x128xf32>
    %102 = vector.shape_cast %99 : vector<24x128xf32> to vector<1x24x128xf32>
    tpu.vector_store %arg12[%c0_146, %c0_147, %c0_148], %102 {strides = array<i32>} : memref<1x24x128xf32, #tpu.memory_space<vmem>>, vector<1x24x128xf32>,
    return
  }
  func.func @transform_0(%arg0: i32) -> (i32, i32, i32) {
    %c0_i32 = arith.constant 0 : i32
    %c0_i32_0 = arith.constant 0 : i32
    %c0_i32_1 = arith.constant 0 : i32
    return %arg0, %c0_i32, %c0_i32_0 : i32, i32, i32
  }
  func.func @transform_1(%arg0: i32) -> (i32, i32) {
    %c0_i32 = arith.constant 0 : i32
    %c0_i32_0 = arith.constant 0 : i32
    %c0_i32_1 = arith.constant 0 : i32
    return %c0_i32, %c0_i32_0 : i32, i32
  }
  func.func @transform_2(%arg0: i32) -> (i32, i32) {
    %c0_i32 = arith.constant 0 : i32
    %c0_i32_0 = arith.constant 0 : i32
    %c0_i32_1 = arith.constant 0 : i32
    return %c0_i32, %c0_i32_0 : i32, i32
  }
  func.func @transform_3(%arg0: i32) -> (i32, i32) {
    %c0_i32 = arith.constant 0 : i32
    %c0_i32_0 = arith.constant 0 : i32
    %c0_i32_1 = arith.constant 0 : i32
    return %c0_i32, %c0_i32_0 : i32, i32
  }
  func.func @transform_4(%arg0: i32) -> (i32, i32) {
    %c0_i32 = arith.constant 0 : i32
    %c0_i32_0 = arith.constant 0 : i32
    %c0_i32_1 = arith.constant 0 : i32
    return %c0_i32, %c0_i32_0 : i32, i32
  }
  func.func @transform_5(%arg0: i32) -> (i32, i32) {
    %c0_i32 = arith.constant 0 : i32
    %c0_i32_0 = arith.constant 0 : i32
    %c0_i32_1 = arith.constant 0 : i32
    return %c0_i32, %c0_i32_0 : i32, i32
  }
  func.func @transform_6(%arg0: i32) -> (i32, i32) {
    %c0_i32 = arith.constant 0 : i32
    %c0_i32_0 = arith.constant 0 : i32
    %c0_i32_1 = arith.constant 0 : i32
    return %c0_i32, %c0_i32_0 : i32, i32
  }
  func.func @transform_7(%arg0: i32) -> (i32, i32) {
    %c0_i32 = arith.constant 0 : i32
    %c0_i32_0 = arith.constant 0 : i32
    %c0_i32_1 = arith.constant 0 : i32
    return %c0_i32, %c0_i32_0 : i32, i32
  }
  func.func @transform_8(%arg0: i32) -> (i32, i32) {
    %c0_i32 = arith.constant 0 : i32
    %c0_i32_0 = arith.constant 0 : i32
    %c0_i32_1 = arith.constant 0 : i32
    return %c0_i32, %c0_i32_0 : i32, i32
  }
  func.func @transform_9(%arg0: i32) -> (i32, i32) {
    %c0_i32 = arith.constant 0 : i32
    %c0_i32_0 = arith.constant 0 : i32
    %c0_i32_1 = arith.constant 0 : i32
    return %c0_i32, %c0_i32_0 : i32, i32
  }
  func.func @transform_10(%arg0: i32) -> (i32, i32) {
    %c0_i32 = arith.constant 0 : i32
    %c0_i32_0 = arith.constant 0 : i32
    %c0_i32_1 = arith.constant 0 : i32
    return %c0_i32, %c0_i32_0 : i32, i32
  }
  func.func @transform_11(%arg0: i32) -> (i32, i32, i32) {
    %c0_i32 = arith.constant 0 : i32
    %c0_i32_0 = arith.constant 0 : i32
    %c0_i32_1 = arith.constant 0 : i32
    return %arg0, %c0_i32, %c0_i32_0 : i32, i32, i32
  }
}

</mosaic_0001>

<bundles_post_ra>
// kernel: postnet_forward.1
= control target key start
LH: loop header
LB: loop body
LE: loop exit
PB: predicated region body
PF: predicated region fallthrough
CT: control target
= control target key end

     0   :  { %s5593_s0 = inlined_call_operand.vmem [shape: bf16[2,24,128], index: 0, kind: input, shape index: {}]   ;;  %s5594_s1 = inlined_call_operand.hbm [shape: bf16[640,128], index: 1, kind: input, shape index: {}]   ;;  %s5595_s2 = inlined_call_operand.hbm [shape: bf16[640,128], index: 2, kind: input, shape index: {}]   ;;  %s5596_s3 = inlined_call_operand.hbm [shape: bf16[640,128], index: 3, kind: input, shape index: {}]   ;;  %s5597_s4 = inlined_call_operand.hbm [shape: bf16[640,128], index: 4, kind: input, shape index: {}]   ;;  %s5598_s5 = inlined_call_operand.hbm [shape: bf16[640,128], index: 5, kind: input, shape index: {}]   ;;  %s5599_s6 = inlined_call_operand.vmem [shape: f32[1,128], index: 6, kind: input, shape index: {}]   ;;  %s5600_s7 = inlined_call_operand.vmem [shape: f32[1,128], index: 7, kind: input, shape index: {}]   ;;  %s5601_s8 = inlined_call_operand.vmem [shape: f32[1,128], index: 8, kind: input, shape index: {}]   ;;  %s5602_s9 = inlined_call_operand.vmem [shape: f32[1,128], index: 9, kind: input, shape index: {}]   ;;  %s5603_s10 = inlined_call_operand.vmem [shape: f32[1,128], index: 10, kind: input, shape index: {}]   ;;  %s5604_s11 = inlined_call_operand.vmem [shape: f32[2,24,128], index: 11, kind: output, shape index: {}]  }
   0x1   :  { %5605 = sst [smem:[#allocation16_spill]] %s5594_s1 }
   0x2   :  { %16 = vsyncpa [#allocation6], 0 }
   0x3   :  { %17 = vsyncpa [#allocation8], 0 }
   0x4   :  { %18 = vsyncpa [#allocation11], 0  ;;  %s5302_s17 = smov 0  }
   0x5 LB: > { %s5308_s18 = sadd.s32 4294967295, %s5232_s17   ;;  %p3811_p0 = scmp.ge.s32.totalorder %s5232_s17, 1  ;;  %s5232_s17 = sphi %s5302_s17, %s24_s17  }
   0x6   : > { %p291_p1 = scmp.lt.s32.totalorder %s5232_s17, 3  ;;  %p5009_p2 = scmp.eq.s32.totalorder %s5308_s18, 0 }
   0x7   : > { %s316_s21 = sshll.u32 %s5595_s2, 4  ;;  %s344_s25 = sshll.u32 %s5597_s4, 4  ;;  %s317_s21 = int_to_ptr.hbm [resolvable:$true] %s316_s21  ;;  %s345_s25 = int_to_ptr.hbm [resolvable:$true] %s344_s25 }
   0x8   : > { %p5316_p3 = pnand %p3811_p0, %p291_p1  ;;  %s5234_s26 = smov [#allocation7]  }
   0x9   : > { %s318_s27 = sshll.u32 %s5234_s26, 4  ;;  %s5235_s29 = smov [#allocation10]   ;;  %s319_s27 = int_to_ptr.vmem [resolvable:$true] %s318_s27 }
   0xa   : > { %p4993_p4 = pneg %p5316_p3  ;;  %s346_s30 = sshll.u32 %s5235_s29, 4  ;;  %s347_s30 = int_to_ptr.vmem [resolvable:$true] %s346_s30 }
   0xb   : > { %s5608_s1 = sld [smem:[#allocation16_spill]]  ;;  %s5236_s15 = smov 64  }
   0xc   : > { %p5327_p5 = pnand %p5009_p2, %p4993_p4  ;;  %s5237_s16 = smov 4  }
   0xd   : > { %s5238_s19 = smov [#allocation5]   ;;  %s330_s26 = sshll.u32 %s5596_s3, 4  ;;  %s331_s26 = int_to_ptr.hbm [resolvable:$true] %s330_s26 }
   0xe   : > { %4999 = dma.hbm_to_vmem [thread:$0]  (!%p5327_p5), %s317_s21, 5120, %s319_s27, [#allocation8], %s5236_s15, %s5236_s15, %s5237_s16  }
   0xf   : > { %5005 = dma.hbm_to_vmem [thread:$0]  (!%p5327_p5), %s345_s25, 5120, %s347_s30, [#allocation11], %s5236_s15, %s5236_s15, %s5237_s16  }
  0x10   : > { %s304_s20 = sshll.u32 %s5238_s19, 4  ;;  %s358_s13 = sshll.u32 %s5598_s5, 4  ;;  %s305_s20 = int_to_ptr.vmem [resolvable:$true] %s304_s20  ;;  %s359_s13 = int_to_ptr.hbm [resolvable:$true] %s358_s13 }
  0x11   : > { %s302_s14 = sshll.u32 %s5608_s1, 4  ;;  %s5239_s1 = smov [#allocation9]   ;;  %s303_s14 = int_to_ptr.hbm [resolvable:$true] %s302_s14 }
  0x12   : > { %4996 = dma.hbm_to_vmem [thread:$0]  (!%p5327_p5), %s303_s14, 5120, %s305_s20, [#allocation6], %s5236_s15, %s5236_s15, %s5237_s16  }
  0x13   : > { %s332_s21 = sshll.u32 %s5239_s1, 4  ;;  %s5240_s25 = smov [#allocation12]   ;;  %s333_s21 = int_to_ptr.vmem [resolvable:$true] %s332_s21 }
  0x14   : > { %5002 = dma.hbm_to_vmem [thread:$0]  (!%p5327_p5), %s331_s26, 5120, %s333_s21, [#allocation8], %s5236_s15, %s5236_s15, %s5237_s16  }
  0x15   : > { %s360_s27 = sshll.u32 %s5240_s25, 4  ;;  %399 = sbr.rel (%p5316_p3) target bundleno = 1078 (0x436), region = 64  ;;  %s361_s27 = int_to_ptr.vmem [resolvable:$true] %s360_s27 }
  0x16   : > { %5008 = dma.hbm_to_vmem [thread:$0]  (!%p5327_p5), %s359_s13, 5120, %s361_s27, [#allocation11], %s5236_s15, %s5236_s15, %s5237_s16  }
  0x1a   : > { %5219 = dma.done.wait (%p5009_p2), [#allocation6], 5120  }
  0x1b   : > { %5221 = vsyncadd (%p5009_p2), [#allocation6], 4294962176 }
  0x1c   : > { %5223 = dma.done.wait (%p5009_p2), [#allocation8], 10240  }
  0x1d   : > { %5225 = vsyncadd (%p5009_p2), [#allocation8], 4294957056 }
  0x1e   : > { %5227 = dma.done.wait (%p5009_p2), [#allocation11], 10240  }
  0x1f   : > { %5229 = vsyncadd (%p5009_p2), [#allocation11], 4294957056  ;;  %v5241_v0 = vmov 0   ;;  %p460_p6 = scmp.lt.s32.totalorder %s5308_s18, 1  ;;  %v4750_v1 = vld [vmem:[#allocation5 + $0x38] sm:$0xff]  ;;  %v4749_v5 = vld [vmem:[#allocation5 + $0x30] sm:$0xff] }
  0x20   : > { %471 = vst [vmem:[#allocation2] sm:$0x1] %v5241_v0  ;;  %v4766_v2 = vld [vmem:[#allocation5 + $0xb8] sm:$0xff]  ;;  %1035 = vmatpush.bf16.msra.mxu0 %v4750_v1  ;;  %v4765_v6 = vld [vmem:[#allocation5 + $0xb0] sm:$0xff]  ;;  %v4748_v9 = vld [vmem:[#allocation5 + $0x28] sm:$0xff]  ;;  %vm481_vm0 = vcmask 1040384  }
  0x21   : > { %472 = vst [vmem:[#allocation2 + $0xc] sm:$0x2] %v5241_v0  ;;  %s5620_s18 = smov (!%p460_p6, %s5308_s18), 1  ;;  %v4758_v3 = vld [vmem:[#allocation5 + $0x78] sm:$0xff]  ;;  %1071 = vmatpush.bf16.msra.mxu2 %v4766_v2  ;;  %v4757_v7 = vld [vmem:[#allocation5 + $0x70] sm:$0xff]  ;;  %v4764_v10 = vld [vmem:[#allocation5 + $0xa8] sm:$0xff] }
  0x22   : > { %473 = vst [vmem:[#allocation3] sm:$0x1] %v5241_v0  ;;  %v4774_v4 = vld [vmem:[#allocation5 + $0xf8] sm:$0xff]  ;;  %1053 = vmatpush.bf16.msra.mxu1 %v4758_v3  ;;  %v4773_v8 = vld [vmem:[#allocation5 + $0xf0] sm:$0xff]  ;;  %s4971_s1 = smul.u32 12, %s5620_s18  ;;  %v4756_v11 = vld [vmem:[#allocation5 + $0x68] sm:$0xff] }
  0x23   : > { %474 = vst [vmem:[#allocation3 + $0xc] sm:$0x2] %v5241_v0  ;;  %1089 = vmatpush.bf16.msra.mxu3 %v4774_v4  ;;  %v4772_v12 = vld [vmem:[#allocation5 + $0xe8] sm:$0xff]  ;;  %v4747_v13 = vld [vmem:[#allocation5 + $0x20] sm:$0xff]  ;;  %vm482_vm1 = vcmask 1044484   ;;  %v4746_v21 = vld [vmem:[#allocation5 + $0x18] sm:$0xff] }
  0x24   : > { %1036 = vmatpush.bf16.msra.mxu0 %v4749_v5  ;;  %s464_s30 = scalar_lea.vmem %s5593_s0, %s4971_s1  ;;  %v4763_v14 = vld [vmem:[#allocation5 + $0xa0] sm:$0xff]  ;;  %vm5372_vm2 = vmor %vm481_vm0, %vm482_vm1  ;;  %v4762_v25 = vld [vmem:[#allocation5 + $0x98] sm:$0xff]  ;;  %vm561_vm3 = vcmask 1042432   ;;  %vm562_vm4 = vcmask 1046532   ;;  %vm510_vm5 = vsmask.f32 3328 }
  0x25   : > { %1072 = vmatpush.bf16.msra.mxu2 %v4765_v6  ;;  %v4755_v15 = vld [vmem:[#allocation5 + $0x60] sm:$0xff]  ;;  %v476_v18 = vld [vmem:[%s464_s30 + $0x4] sm:$0xf]  ;;  %v477_v19 = vld [vmem:[%s464_s30 + $0x8] sm:$0xf]  ;;  %vm639_vm12 = vcmask 1041408  }
  0x26   : > { %1054 = vmatpush.bf16.msra.mxu1 %v4757_v7  ;;  %v475_v16 = vld [vmem:[%s464_s30] sm:$0xf]  ;;  %v486_v23 = vrot.slane %v476_v18, 7  ;;  %v489_v24 = vrot.slane %v477_v19, 7  ;;  %v4754_v29 = vld [vmem:[#allocation5 + $0x58] sm:$0xff]  ;;  %v4745_v33 = vld [vmem:[#allocation5 + $0x10] sm:$0xff] }
  0x27   : > { %1090 = vmatpush.bf16.msra.mxu3 %v4773_v8  ;;  %v4771_v17 = vld [vmem:[#allocation5 + $0xe0] sm:$0xff]  ;;  %v484_v20 = vrot.slane %v475_v16, 7  ;;  %v4770_v30 = vld [vmem:[#allocation5 + $0xd8] sm:$0xff]  ;;  %v4761_v34 = vld [vmem:[#allocation5 + $0x90] sm:$0xff]  ;;  %vm511_vm7 = vsmask.f32 7440 }
  0x28   : > { %1037 = vmatpush.bf16.msra.mxu0 %v4748_v9  ;;  %v488_v27 = vrot.slane %v486_v23, 4  ;;  %v491_v28 = vrot.slane %v489_v24, 4  ;;  %v4753_v35 = vld [vmem:[#allocation5 + $0x50] sm:$0xff]  ;;  %v4744_v40 = vld [vmem:[#allocation5 + $0x8] sm:$0xff]  ;;  %vm5380_vm6 = vmor %vm561_vm3, %vm562_vm4  ;;  %vm584_vm8 = vsmask.f32 2304 }
  0x29   : > { %1073 = vmatpush.bf16.msra.mxu2 %v4764_v10  ;;  %v485_v26 = vrot.slane %v484_v20, 4  ;;  %496 = vst [vmem:[#allocation2] sm:$0xe] %v484_v20  ;;  %v4769_v36 = vld [vmem:[#allocation5 + $0xd0] sm:$0xff]  ;;  %v4760_v44 = vld [vmem:[#allocation5 + $0x88] sm:$0xff]  ;;  %v4743_v51 = vld [vmem:[#allocation5] sm:$0xff] }
  0x2a   : > { %1055 = vmatpush.bf16.msra.mxu1 %v4756_v11  ;;  %v490_v32 = vsel %vm5372_vm2, %v488_v27, %v489_v24  ;;  %499 = vst [vmem:[#allocation2 + $0xc] sm:$0x1] %v491_v28  ;;  %v4752_v45 = vld [vmem:[#allocation5 + $0x48] sm:$0xff]  ;;  %v4759_v52 = vld [vmem:[#allocation5 + $0x80] sm:$0xff]  ;;  %vm585_vm9 = vsmask.f32 6416  ;;  %vm5390_vm10 = vmor %vm510_vm5, %vm511_vm7 }
  0x2b   : > { %1091 = vmatpush.bf16.msra.mxu3 %v4772_v12  ;;  %v487_v31 = vsel %vm5372_vm2, %v485_v26, %v486_v23  ;;  %498 = vst [vmem:[#allocation2 + $0x8] sm:$0xf] %v490_v32  ;;  %v4768_v46 = vld [vmem:[#allocation5 + $0xc8] sm:$0xff]  ;;  %v4751_v61 = vld [vmem:[#allocation5 + $0x40] sm:$0xff]  ;;  %v4782_v11 = vld [vmem:[#allocation5 + $0x138] sm:$0xff]  ;;  %vm640_vm13 = vcmask 1045508  }
  0x2c   : > { %1038 = vmatpush.bf16.msra.mxu0 %v4747_v13  ;;  %497 = vst [vmem:[#allocation2 + $0x4] sm:$0xf] %v487_v31  ;;  %v4767_v3 = vld [vmem:[#allocation5 + $0xc0] sm:$0xff]  ;;  %vm5404_vm11 = vmor %vm584_vm8, %vm585_vm9  ;;  %s4972_s13 = smul.u32 24, %s5620_s18 }
  0x2d   : > { %1074 = vmatpush.bf16.msra.mxu2 %v4763_v14  ;;  %vm5410_vm14 = vmor %vm639_vm12, %vm640_vm13 }
  0x2e   : > { %1056 = vmatpush.bf16.msra.mxu1 %v4755_v15  ;;  %s469_s27 = scalar_lea.vmem %s5604_s11, %s4972_s13 }
  0x2f   : > { %1092 = vmatpush.bf16.msra.mxu3 %v4771_v17 }
  0x30   : > { %1039 = vmatpush.bf16.msra.mxu0 %v4746_v21  ;;  %v500_v37 = vld [vmem:[#allocation2] sm:$0xf] }
  0x31   : > { %1075 = vmatpush.bf16.msra.mxu2 %v4762_v25  ;;  %v553_v38 = vld [vmem:[#allocation2] sm:$0xe]  ;;  %503 = vst [vmem:[#allocation4] sm:$0xf] %v500_v37  ;;  %v556_v53 = vld [vmem:[#allocation2 + $0xc] sm:$0x1] }
  0x32   : > { %1057 = vmatpush.bf16.msra.mxu1 %v4754_v29  ;;  %v506_v39 = vld [vmem:[#allocation2] sm:$0xf]  ;;  %v3826_v47 = vrot.slane %v553_v38, 9  ;;  %v555_v56 = vld [vmem:[#allocation2 + $0x8] sm:$0xf]  ;;  %v572_v57 = vrot.slane %v556_v53, 5 }
  0x33   : > { %1093 = vmatpush.bf16.msra.mxu3 %v4770_v30  ;;  %v514_v42 = vshrl.u32 %v506_v39, 16  ;;  %v517_v43 = vshll.u32 %v506_v39, 16  ;;  %v501_v48 = vld [vmem:[#allocation2 + $0x4] sm:$0xf]  ;;  %v508_v58 = vld [vmem:[#allocation2 + $0x8] sm:$0xf] }
  0x34   : > { %1040 = vmatpush.bf16.msra.mxu0 %v4745_v33  ;;  %v554_v49 = vld [vmem:[#allocation2 + $0x4] sm:$0xf]  ;;  %504 = vst [vmem:[#allocation4 + $0x14] sm:$0xf] %v501_v48  ;;  %v580_v60 = vld [vmem:[#allocation2] sm:$0xe] }
  0x35   : > { %1076 = vmatpush.bf16.msra.mxu2 %v4761_v34  ;;  %v507_v50 = vld [vmem:[#allocation2 + $0x4] sm:$0xf]  ;;  %v566_v54 = vrot.slane %v554_v49, 5  ;;  %v516_v55 = vrot.slane %v514_v42, 4  ;;  %v519_v59 = vrot.slane %v517_v43, 5  ;;  %v569_v0 = vrot.slane %v555_v56, 5 }
  0x36   : > { %1058 = vmatpush.bf16.msra.mxu1 %v4753_v35  ;;  %v509_v1 = vld [vmem:[#allocation2 + $0xc] sm:$0x1]  ;;  %v523_v2 = vshll.u32 %v507_v50, 16  ;;  %v527_v5 = vshrl.u32 %v507_v50, 16  ;;  %v533_v6 = vshll.u32 %v508_v58, 16  ;;  %v537_v7 = vshrl.u32 %v508_v58, 16 }
  0x37   : > { %1094 = vmatpush.bf16.msra.mxu3 %v4769_v36  ;;  %v567_v62 = vsel %vm5380_vm6, %v3826_v47, %v566_v54  ;;  %v568_v63 = vrot.slane %v566_v54, 4  ;;  %v520_v4 = vor.u32 %v519_v59, %v516_v55  ;;  %v571_v10 = vrot.slane %v569_v0, 4  ;;  %v581_v21 = vld [vmem:[#allocation2 + $0x4] sm:$0xf]  ;;  %v582_v23 = vld [vmem:[#allocation2 + $0x8] sm:$0xf] }
  0x38   : > { %1041 = vmatpush.bf16.msra.mxu0 %v4744_v40  ;;  %577 = vst [vmem:[#allocation4 + $0x8] sm:$0xf] %v567_v62  ;;  %v3830_v8 = vld [vmem:[#allocation4] sm:$0xf]  ;;  %v525_v13 = vrot.slane %v523_v2, 5  ;;  %v543_v14 = vshll.u32 %v509_v1, 16 }
  0x39   : > { %1077 = vmatpush.bf16.msra.mxu2 %v4760_v44  ;;  %v570_v9 = vsel %vm5380_vm6, %v568_v63, %v569_v0  ;;  %v521_v15 = vrot.slane %v520_v4, 4  ;;  %v529_v16 = vrot.slane %v527_v5, 4  ;;  %v535_v17 = vrot.slane %v533_v6, 5  ;;  %v583_v29 = vld [vmem:[#allocation2 + $0xc] sm:$0x3]  ;;  %v4780_v53 = vld [vmem:[#allocation5 + $0x128] sm:$0xff] }
  0x3a   : > { %1059 = vmatpush.bf16.msra.mxu1 %v4752_v45  ;;  %578 = vst [vmem:[#allocation4 + $0x1c] sm:$0xf] %v570_v9  ;;  %v539_v18 = vrot.slane %v537_v7, 4  ;;  %v573_v19 = vsel %vm5380_vm6, %v571_v10, %v572_v57  ;;  %v545_v20 = vrot.slane %v543_v14, 5  ;;  %v588_v24 = vshrl.u32 %v580_v60, 16  ;;  %v4781_v34 = vld [vmem:[#allocation5 + $0x130] sm:$0xff] }
  0x3b   : > { %1095 = vmatpush.bf16.msra.mxu3 %v4768_v46  ;;  %v4740_v25 = vld [vmem:[#allocation4 + $0x10] sm:$0xf0]  ;;  %579 = vst [vmem:[#allocation4 + $0x30] sm:$0xf] %v573_v19  ;;  %v526_v26 = vsel %vm5390_vm10, %v521_v15, %v525_v13  ;;  %v530_v27 = vor.u32 %v529_v16, %v525_v13  ;;  %v591_v32 = vshll.u32 %v580_v60, 16  ;;  %v597_v33 = vshrl.u32 %v581_v21, 16 }
  0x3c   : > { %1042 = vmatpush.bf16.msra.mxu0 %v4743_v51  ;;  %v540_v28 = vor.u32 %v539_v18, %v535_v17  ;;  %v3831_v30 = vor.u32 %v4740_v25, %v3830_v8  ;;  %550 = vst [vmem:[#allocation4 + $0x4] sm:$0xf] %v526_v26  ;;  %v590_v31 = vrot.slane %v588_v24, 5  ;;  %v600_v37 = vshll.u32 %v581_v21, 16  ;;  %v502_v39 = vld [vmem:[#allocation2 + $0x8] sm:$0xf] }
  0x3d   : > { %1078 = vmatpush.bf16.msra.mxu2 %v4759_v52  ;;  %v531_v35 = vrot.slane %v530_v27, 4  ;;  %v607_v38 = vshrl.u32 %v582_v23, 16  ;;  %v593_v42 = vrot.slane %v591_v32, 6  ;;  %v599_v43 = vrot.slane %v597_v33, 5  ;;  %505 = vst [vmem:[#allocation4 + $0x28] sm:$0xf] %v502_v39 }
  0x3e   : > { %1060 = vmatpush.bf16.msra.mxu1 %v4751_v61  ;;  %v541_v36 = vrot.slane %v540_v28, 4  ;;  %v610_v44 = vshll.u32 %v582_v23, 16  ;;  %v617_v45 = vshrl.u32 %v583_v29, 16  ;;  %v602_v48 = vrot.slane %v600_v37, 6  ;;  %v632_v59 = vld [vmem:[#allocation2 + $0x4] sm:$0xf] }
  0x3f   : > { %1096 = vmatpush.bf16.msra.mxu3 %v4767_v3  ;;  %1043 = vmatmul.bf16.vlgmr.msra.gmra.mxu0 %v3831_v30  ;;  %v3838_v40 = vld [vmem:[#allocation4 + $0x8] sm:$0xf]  ;;  %v536_v46 = vsel %vm5390_vm10, %v531_v35, %v535_v17  ;;  %v609_v49 = vrot.slane %v607_v38, 5  ;;  %v594_v51 = vor.u32 %v593_v42, %v590_v31  ;;  %v620_v58 = vshll.u32 %v583_v29, 16  ;;  %v631_v62 = vld [vmem:[#allocation2] sm:$0xc] }
  0x40   : > { %1107 = vmatpush.bf16.msrb.mxu0 %v4782_v11  ;;  %v546_v47 = vsel %vm5390_vm10, %v541_v36, %v545_v20  ;;  %551 = vst [vmem:[#allocation4 + $0x18] sm:$0xf] %v536_v46  ;;  %v612_v52 = vrot.slane %v610_v44, 6  ;;  %v603_v56 = vor.u32 %v602_v48, %v599_v43  ;;  %v619_v57 = vrot.slane %v617_v45, 5  ;;  %v633_v63 = vld [vmem:[#allocation2 + $0x8] sm:$0xf] }
  0x41   : > { %v4741_v50 = vld [vmem:[#allocation4 + $0x18] sm:$0xf0]  ;;  %552 = vst [vmem:[#allocation4 + $0x2c] sm:$0xf] %v546_v47  ;;  %v595_v60 = vrot.slane %v594_v51, 4  ;;  %v622_v1 = vrot.slane %v620_v58, 6 }
  0x42   : > { %v3839_v54 = vor.u32 %v4741_v50, %v3838_v40  ;;  %v613_v61 = vor.u32 %v612_v52, %v609_v49  ;;  %v605_v0 = vrot.slane %v603_v56, 4  ;;  %v3827_v2 = vrot.slane %v631_v62, 10  ;;  %v4779_v5 = vld [vmem:[#allocation5 + $0x120] sm:$0xff]  ;;  %v634_v9 = vld [vmem:[#allocation2 + $0xc] sm:$0x3]  ;;  %v4778_v23 = vld [vmem:[#allocation5 + $0x118] sm:$0xff] }
  0x43   : > { %v604_v3 = vsel %vm5404_vm11, %v595_v60, %v603_v56  ;;  %v644_v7 = vrot.slane %v632_v59, 6  ;;  %v647_v8 = vrot.slane %v633_v63, 6  ;;  %v4738_v10 = vld [vmem:[#allocation4 + $0x4] sm:$0xf]  ;;  %v623_v13 = vor.u32 %v622_v1, %v619_v57  ;;  %v4777_v29 = vld [vmem:[#allocation5 + $0x110] sm:$0xff]  ;;  %v4775_v37 = vld [vmem:[#allocation5 + $0x100] sm:$0xff] }
  0x44   : > { %1108 = vmatpush.bf16.msrb.mxu0 %v4781_v34  ;;  %1079 = vmatmul.bf16.vlgmr.msra.gmra.mxu2 %v3839_v54  ;;  %v615_v4 = vrot.slane %v613_v61, 4  ;;  %v614_v11 = vsel %vm5404_vm11, %v605_v0, %v613_v61  ;;  %628 = vst [vmem:[#allocation4 + $0xc] sm:$0xf] %v604_v3  ;;  %v650_v14 = vrot.slane %v634_v9, 6  ;;  %v4776_v34 = vld [vmem:[#allocation5 + $0x108] sm:$0xff]  ;;  %v4795_v0 = vld [vmem:[#allocation7 + $0x38] sm:$0xff] }
  0x45   : > { %629 = vst [vmem:[#allocation4 + $0x20] sm:$0xf] %v614_v11  ;;  %v645_v15 = vsel %vm5410_vm14, %v3827_v2, %v644_v7  ;;  %v646_v16 = vrot.slane %v644_v7, 4  ;;  %v649_v17 = vrot.slane %v647_v8, 4  ;;  %1679 = vmatpush.bf16.msrb.mxu1 %v4795_v0  ;;  %v4799_v0 = vld [vmem:[#allocation7 + $0x58] sm:$0xff] }
  0x46   : > { %v624_v19 = vsel %vm5404_vm11, %v615_v4, %v623_v13  ;;  %655 = vst [vmem:[#allocation4 + $0x10] sm:$0xf] %v645_v15 }
  0x47   : > { %v3832_v18 = vld [vmem:[#allocation4 + $0x14] sm:$0xf0]  ;;  %630 = vst [vmem:[#allocation4 + $0x34] sm:$0xf] %v624_v19  ;;  %v648_v24 = vsel %vm5410_vm14, %v646_v16, %v647_v8  ;;  %v651_v25 = vsel %vm5410_vm14, %v649_v17, %v650_v14  ;;  %v4793_v14 = vld [vmem:[#allocation7 + $0x28] sm:$0xff] }
  0x48   : > { %1109 = vmatpush.bf16.msrb.mxu0 %v4780_v53  ;;  %v3835_v20 = vor.u32 %v4738_v10, %v3832_v18  ;;  %v664_v21 = vld [vmem:[#allocation4 + $0x28] sm:$0xff]  ;;  %656 = vst [vmem:[#allocation4 + $0x24] sm:$0xf] %v648_v24  ;;  %v5035_v53 = vld [vmem:[%s5599_s6] ss:$0 sm:$0xff]  ;;  %v4811_v18 = vld [vmem:[#allocation7 + $0xb8] sm:$0xff] }
  0x49   : > { %v770_v26 = vunpack.c.l.b16 %v664_v21  ;;  %657 = vst [vmem:[#allocation4 + $0x38] sm:$0xf] %v651_v25  ;;  %v771_v36 = vunpack.c.h.b16 %v664_v21  ;;  %v4792_v21 = vld [vmem:[#allocation7 + $0x20] sm:$0xff]  ;;  %1715 = vmatpush.bf16.msrb.mxu3 %v4811_v18  ;;  %v4803_v25 = vld [vmem:[#allocation7 + $0x78] sm:$0xff] }
  0x4a   : > { %1061 = vmatmul.bf16.vlgmr.msra.gmra.mxu1 %v3835_v20  ;;  %1697 = vmatpush.bf16.msrb.mxu2 %v4803_v25 }
  0x4b   : > { %v780_v27 = vpack.c.b16 %v770_v26, %v770_v26  ;;  %v4739_v28 = vld [vmem:[#allocation4 + $0xc] sm:$0xf]  ;;  %v781_v38 = vpack.c.b16 %v771_v36, %v771_v36  ;;  %v4809_v36 = vld [vmem:[#allocation7 + $0xa8] sm:$0xff] }
  0x4c   : > { %1110 = vmatpush.bf16.msrb.mxu0 %v4779_v5  ;;  %v3840_v30 = vld [vmem:[#allocation4 + $0x1c] sm:$0xf0]  ;;  %v4794_v5 = vld [vmem:[#allocation7 + $0x30] sm:$0xff] }
  0x4d   : > { %v3843_v31 = vor.u32 %v4739_v28, %v3840_v30  ;;  %v3846_v39 = vld [vmem:[#allocation4 + $0x10] sm:$0xf]  ;;  %1680 = vmatpush.bf16.msrb.mxu1 %v4794_v5  ;;  %v4791_v30 = vld [vmem:[#allocation7 + $0x18] sm:$0xff] }
  0x4e   : > { %v665_v32 = vld [vmem:[#allocation4 + $0x30] sm:$0xff] }
  0x4f   : > { %1048 = vmatmul.bf16.gmra.mxu0 %v780_v27  ;;  %1097 = vmatmul.bf16.vlgmr.msra.gmra.mxu3 %v3843_v31  ;;  %v772_v33 = vunpack.c.l.b16 %v665_v32  ;;  %v4742_v40 = vld [vmem:[#allocation4 + $0x20] sm:$0xf0]  ;;  %v773_v42 = vunpack.c.h.b16 %v665_v32  ;;  %v4810_v28 = vld [vmem:[#allocation7 + $0xb0] sm:$0xff] }
  0x50   : > { %1111 = vmatpush.bf16.msrb.mxu0 %v4778_v23  ;;  %v3847_v43 = vor.u32 %v4742_v40, %v3846_v39  ;;  %v666_v45 = vld [vmem:[#allocation4 + $0x38] sm:$0xf]  ;;  %1716 = vmatpush.bf16.msrb.mxu3 %v4810_v28  ;;  %v4804_v28 = vld [vmem:[#allocation7 + $0x80] sm:$0xff] }
  0x51   : > { %v782_v35 = vpack.c.b16 %v772_v33, %v772_v33  ;;  %v783_v44 = vpack.c.b16 %v773_v42, %v773_v42  ;;  %v774_v46 = vunpack.c.l.b16 %v666_v45  ;;  %1681 = vmatpush.bf16.msrb.mxu1 %v4793_v14  ;;  %v4802_v33 = vld [vmem:[#allocation7 + $0x70] sm:$0xff] }
  0x52   : > { %1698 = vmatpush.bf16.msrb.mxu2 %v4802_v33  ;;  %v4790_v42 = vld [vmem:[#allocation7 + $0x10] sm:$0xff] }
  0x53   : > { %v784_v47 = vpack.c.b16 %v774_v46, %v774_v46  ;;  %v4808_v46 = vld [vmem:[#allocation7 + $0xa0] sm:$0xff] }
  0x54   : > { %1112 = vmatpush.bf16.msrb.mxu0 %v4777_v29  ;;  %1084 = vmatmul.bf16.gmra.mxu2 %v782_v35  ;;  %v4819_v29 = vld [vmem:[#allocation7 + $0xf8] sm:$0xff] }
  0x55   : > { %1682 = vmatpush.bf16.msrb.mxu1 %v4792_v21  ;;  %1717 = vmatpush.bf16.msrb.mxu3 %v4809_v36 }
  0x58   : > { %1113 = vmatpush.bf16.msrb.mxu0 %v4776_v34 }
  0x59   : > { %1683 = vmatpush.bf16.msrb.mxu1 %v4791_v30  ;;  %1718 = vmatpush.bf16.msrb.mxu3 %v4808_v46  ;;  %v4796_v30 = vld [vmem:[#allocation7 + $0x40] sm:$0xff] }
  0x5a   : > { %1066 = vmatmul.bf16.gmra.mxu1 %v781_v38 }
  0x5c   : > { %1114 = vmatpush.bf16.msrb.mxu0 %v4775_v37  ;;  %v4818_v37 = vld [vmem:[#allocation7 + $0xf0] sm:$0xff] }
  0x5d   : > { %1684 = vmatpush.bf16.msrb.mxu1 %v4790_v42 }
  0x5f   : > { %1115 = vmatmul.bf16.vlgmr.msrb.gmra.mxu0 %v3847_v43  ;;  %1102 = vmatmul.bf16.gmra.mxu3 %v783_v44  ;;  %v4801_v44 = vld [vmem:[#allocation7 + $0x68] sm:$0xff] }
  0x60   : > { %1733 = vmatpush.bf16.msra.mxu0 %v4819_v29  ;;  %1699 = vmatpush.bf16.msrb.mxu2 %v4801_v44  ;;  %v4813_v29 = vld [vmem:[#allocation7 + $0xc8] sm:$0xff] }
  0x64   : > { %1734 = vmatpush.bf16.msra.mxu0 %v4818_v37 }
  0x6f   : > { %1120 = vmatmul.bf16.gmra.mxu0 %v784_v47  ;;  %v4817_v47 = vld [vmem:[#allocation7 + $0xe8] sm:$0xff] }
  0x70   : > { %1735 = vmatpush.bf16.msra.mxu0 %v4817_v47 }
  0xbc   : > { %v1044_v48 = vpop.f32.mrf.mxu0 }
  0xbd   : > { %v1045_v57 = vadd.f32 %v5035_v53, %v1044_v48  ;;  %v4789_v48 = vld [vmem:[#allocation7 + $0x8] sm:$0xff] }
  0xbe   : > { %1685 = vmatpush.bf16.msrb.mxu1 %v4789_v48 }
  0xc4   : > { %v1046_v49 = vpop.f32.mrf.mxu0 }
  0xc5   : > { %v1047_v1 = vadd.f32 %v5035_v53, %v1046_v49 }
  0xc7   : > { %v1080_v50 = vpop.f32.mrf.mxu2  ;;  %v1062_v51 = vpop.f32.mrf.mxu1 }
  0xc8   : > { %v1063_v60 = vadd.f32 %v1062_v51, %v1045_v57  ;;  %v4800_v51 = vld [vmem:[#allocation7 + $0x60] sm:$0xff] }
  0xc9   : > { %1700 = vmatpush.bf16.msrb.mxu2 %v4800_v51 }
  0xca   : > { %v1081_v61 = vadd.f32 %v1080_v50, %v1063_v60 }
  0xcc   : > { %v1049_v52 = vpop.f32.mrf.mxu0 }
  0xcd   : > { %v1050_v15 = vadd.f32 %v5035_v53, %v1049_v52  ;;  %v4807_v53 = vld [vmem:[#allocation7 + $0x98] sm:$0xff]  ;;  %1701 = vmatpush.bf16.msrb.mxu2 %v4799_v0 }
  0xce   : > { %1719 = vmatpush.bf16.msrb.mxu3 %v4807_v53 }
  0xcf   : > { %v1082_v54 = vpop.f32.mrf.mxu2  ;;  %v1064_v56 = vpop.f32.mrf.mxu1 }
  0xd0   : > { %v1065_v7 = vadd.f32 %v1064_v56, %v1047_v1 }
  0xd2   : > { %v1098_v58 = vpop.f32.mrf.mxu3  ;;  %v1083_v9 = vadd.f32 %v1082_v54, %v1065_v7  ;;  %v4816_v54 = vld [vmem:[#allocation7 + $0xe0] sm:$0xff]  ;;  %v4806_v7 = vld [vmem:[#allocation7 + $0x90] sm:$0xff] }
  0xd3   : > { %v1099_v2 = vadd.f32 %v1098_v58, %v1081_v61  ;;  %1736 = vmatpush.bf16.msra.mxu0 %v4816_v54  ;;  %1720 = vmatpush.bf16.msrb.mxu3 %v4806_v7  ;;  %v4812_v54 = vld [vmem:[#allocation7 + $0xc0] sm:$0xff] }
  0xd4   : > { %v1051_v59 = vpop.f32.mrf.mxu0 }
  0xd5   : > { %v4788_v59 = vld [vmem:[#allocation7] sm:$0xff] }
  0xd6   : > { %1686 = vmatpush.bf16.msrb.mxu1 %v4788_v59 }
  0xd7   : > { %v1067_v62 = vpop.f32.mrf.mxu1  ;;  %v1085_v63 = vpop.f32.mrf.mxu2 }
  0xd8   : > { %v1068_v23 = vadd.f32 %v1067_v62, %v1050_v15 }
  0xda   : > { %v1100_v3 = vpop.f32.mrf.mxu3  ;;  %v1086_v26 = vadd.f32 %v1085_v63, %v1068_v23 }
  0xdb   : > { %v1101_v17 = vadd.f32 %v1100_v3, %v1083_v9  ;;  %v4798_v9 = vld [vmem:[#allocation7 + $0x50] sm:$0xff] }
  0xdc   : > { %v1116_v4 = vpop.f32.mrf.mxu0  ;;  %1702 = vmatpush.bf16.msrb.mxu2 %v4798_v9 }
  0xdd   : > { %v1117_v8 = vadd.f32 %v1116_v4, %v1099_v2 }
  0xdf   : > { %v1125_v10 = vpack.c.bf16 %v1117_v8, %v1117_v8  ;;  %v1069_v11 = vpop.f32.mrf.mxu1  ;;  %v1087_v13 = vpop.f32.mrf.mxu2  ;;  %v4815_v8 = vld [vmem:[#allocation7 + $0xd8] sm:$0xff] }
  0xe0   : > { %v4827_v11 = vld [vmem:[#allocation7 + $0x138] sm:$0xff]  ;;  %1737 = vmatpush.bf16.msra.mxu0 %v4815_v8 }
  0xe1   : > { %v1128_v16 = vunpack.c.l.bf16 %v1125_v10  ;;  %1751 = vmatpush.bf16.msra.mxu1 %v4827_v11 }
  0xe2   : > { %v1103_v19 = vpop.f32.mrf.mxu3 }
  0xe3   : > { %5040 = vtanh.f32 %v1128_v16  ;;  %v1104_v35 = vadd.f32 %v1103_v19, %v1086_v26  ;;  %v4805_v16 = vld [vmem:[#allocation7 + $0x88] sm:$0xff] }
  0xe4   : > { %v1118_v20 = vpop.f32.mrf.mxu0  ;;  %v4797_v19 = vld [vmem:[#allocation7 + $0x48] sm:$0xff]  ;;  %1721 = vmatpush.bf16.msrb.mxu3 %v4805_v16 }
  0xe5   : > { %v1119_v24 = vadd.f32 %v1118_v20, %v1101_v17  ;;  %v4814_v17 = vld [vmem:[#allocation7 + $0xd0] sm:$0xff]  ;;  %1703 = vmatpush.bf16.msrb.mxu2 %v4797_v19 }
  0xe6   : > { %v4826_v20 = vld [vmem:[#allocation7 + $0x130] sm:$0xff]  ;;  %1738 = vmatpush.bf16.msra.mxu0 %v4814_v17 }
  0xe7   : > { %v1126_v27 = vpack.c.bf16 %v1119_v24, %v1119_v24  ;;  %1752 = vmatpush.bf16.msra.mxu1 %v4826_v20 }
  0xe8   : > { %1722 = vmatpush.bf16.msrb.mxu3 %v4804_v28 }
  0xe9   : > { %v5041_v31 = vpop.eup %5040  ;;  %v1129_v32 = vunpack.c.l.bf16 %v1126_v27  ;;  %1704 = vmatpush.bf16.msrb.mxu2 %v4796_v30 }
  0xea   : > { %v1134_v34 = vpack.c.bf16 %v5041_v31, %v5041_v31  ;;  %v1105_v39 = vpop.f32.mrf.mxu3  ;;  %1739 = vmatpush.bf16.msra.mxu0 %v4813_v29 }
  0xeb   : > { %5042 = vtanh.f32 %v1129_v32 }
  0xec   : > { %v1140_v38 = vrot.slane %v1134_v34, 7  ;;  %v1121_v40 = vpop.f32.mrf.mxu0 }
  0xed   : > { %v1122_v43 = vadd.f32 %v1121_v40, %v1104_v35  ;;  %v4825_v40 = vld [vmem:[#allocation7 + $0x128] sm:$0xff] }
  0xee   : > { %1152 = vst [vmem:[#allocation3] sm:$0xe] %v1140_v38  ;;  %v1141_v56 = vrot.slane %v1140_v38, 4  ;;  %1753 = vmatpush.bf16.msra.mxu1 %v4825_v40  ;;  %1740 = vmatpush.bf16.msra.mxu0 %v4812_v54 }
  0xef   : > { %v1127_v45 = vpack.c.bf16 %v1122_v43, %v1122_v43 }
  0xf1   : > { %v5043_v49 = vpop.eup %5042  ;;  %v1130_v50 = vunpack.c.l.bf16 %v1127_v45 }
  0xf2   : > { %v1135_v52 = vpack.c.bf16 %v5043_v49, %v5043_v49 }
  0xf3   : > { %5044 = vtanh.f32 %v1130_v50 }
  0xf4   : > { %v1142_v57 = vrot.slane %v1135_v52, 7  ;;  %v1123_v58 = vpop.f32.mrf.mxu0 }
  0xf5   : > { %v1156_v60 = vld [vmem:[#allocation3] sm:$0xf]  ;;  %v4824_v58 = vld [vmem:[#allocation7 + $0x120] sm:$0xff] }
  0xf6   : > { %v1162_v61 = vld [vmem:[#allocation3] sm:$0xf]  ;;  %v1143_v63 = vsel %vm5372_vm2, %v1141_v56, %v1142_v57  ;;  %1159 = vst [vmem:[#allocation4] sm:$0xf] %v1156_v60  ;;  %v1144_v25 = vrot.slane %v1142_v57, 4  ;;  %1754 = vmatpush.bf16.msra.mxu1 %v4824_v58 }
  0xf7   : > { %v1230_v62 = vld [vmem:[#allocation3] sm:$0xe]  ;;  %v1167_v1 = vshrl.u32 %v1162_v61, 16  ;;  %v1170_v2 = vshll.u32 %v1162_v61, 16  ;;  %1153 = vst [vmem:[#allocation3 + $0x4] sm:$0xf] %v1143_v63 }
  0xf8   : > { %v1235_v4 = vshrl.u32 %v1230_v62, 16  ;;  %v1238_v5 = vshll.u32 %v1230_v62, 16  ;;  %v1206_v15 = vld [vmem:[#allocation3] sm:$0xe] }
  0xf9   : > { %v5045_v3 = vpop.eup %5044  ;;  %v1169_v13 = vrot.slane %v1167_v1, 4  ;;  %v1172_v14 = vrot.slane %v1170_v2, 5  ;;  %v1278_v24 = vld [vmem:[#allocation3] sm:$0xc]  ;;  %v4008_v26 = vrot.slane %v1206_v15, 9  ;;  %v4823_v1 = vld [vmem:[#allocation7 + $0x118] sm:$0xff] }
  0xfa   : > { %v1136_v10 = vpack.c.bf16 %v5045_v3, %v5045_v3  ;;  %v1237_v21 = vrot.slane %v1235_v4, 5  ;;  %v1240_v23 = vrot.slane %v1238_v5, 6  ;;  %v4009_v46 = vrot.slane %v1278_v24, 10  ;;  %1755 = vmatpush.bf16.msra.mxu1 %v4823_v1 }
  0xfb   : > { %v1173_v31 = vor.u32 %v1172_v14, %v1169_v13  ;;  %v4822_v14 = vld [vmem:[#allocation7 + $0x110] sm:$0xff] }
  0xfc   : > { %v1145_v18 = vrot.slane %v1136_v10, 7  ;;  %v1241_v42 = vor.u32 %v1240_v23, %v1237_v21 }
  0xfd   : > { %v1174_v50 = vrot.slane %v1173_v31, 4  ;;  %v4012_v63 = vld [vmem:[#allocation4] sm:$0xf] }
  0xfe   : > { %v1147_v27 = vrot.slane %v1145_v18, 4  ;;  %v1157_v32 = vld [vmem:[#allocation3 + $0x4] sm:$0xf]  ;;  %v1146_v35 = vsel %vm5372_vm2, %v1144_v25, %v1145_v18  ;;  %v1242_v59 = vrot.slane %v1241_v42, 4  ;;  %1756 = vmatpush.bf16.msra.mxu1 %v4822_v14 }
  0xff   : > { %v1163_v33 = vld [vmem:[#allocation3 + $0x4] sm:$0xf]  ;;  %1160 = vst [vmem:[#allocation4 + $0x14] sm:$0xf] %v1157_v32 }
 0x100   : > { %v1207_v34 = vld [vmem:[#allocation3 + $0x4] sm:$0xf]  ;;  %v1176_v36 = vshll.u32 %v1163_v33, 16  ;;  %v1180_v37 = vshrl.u32 %v1163_v33, 16  ;;  %1154 = vst [vmem:[#allocation3 + $0x8] sm:$0xf] %v1146_v35 }
 0x101   : > { %v1216_v38 = vrot.slane %v1207_v34, 5  ;;  %v1231_v39 = vld [vmem:[#allocation3 + $0x4] sm:$0xf]  ;;  %1155 = vst [vmem:[#allocation3 + $0xc] sm:$0x1] %v1147_v27 }
 0x102   : > { %v1244_v43 = vshrl.u32 %v1231_v39, 16  ;;  %v1247_v44 = vshll.u32 %v1231_v39, 16  ;;  %v1279_v45 = vld [vmem:[#allocation3 + $0x4] sm:$0xf]  ;;  %v1178_v47 = vrot.slane %v1176_v36, 5  ;;  %v1182_v48 = vrot.slane %v1180_v37, 4 }
 0x103   : > { %v1288_v49 = vrot.slane %v1279_v45, 6  ;;  %v1217_v53 = vsel %vm5380_vm6, %v4008_v26, %v1216_v38  ;;  %v1218_v62 = vrot.slane %v1216_v38, 4 }
 0x104   : > { %v1246_v51 = vrot.slane %v1244_v43, 5  ;;  %v1249_v52 = vrot.slane %v1247_v44, 6  ;;  %v1183_v56 = vor.u32 %v1182_v48, %v1178_v47  ;;  %1227 = vst [vmem:[#allocation4 + $0x8] sm:$0xf] %v1217_v53  ;;  %v1179_v61 = vsel %vm5390_vm10, %v1174_v50, %v1178_v47  ;;  %v4821_v44 = vld [vmem:[#allocation7 + $0x108] sm:$0xff]  ;;  %v4820_v53 = vld [vmem:[#allocation7 + $0x100] sm:$0xff] }
 0x105   : > { %v1289_v57 = vsel %vm5410_vm14, %v4009_v46, %v1288_v49  ;;  %1203 = vst [vmem:[#allocation4 + $0x4] sm:$0xf] %v1179_v61  ;;  %v1290_v3 = vrot.slane %v1288_v49, 4  ;;  %1757 = vmatpush.bf16.msra.mxu1 %v4821_v44  ;;  %v4838_v44 = vld [vmem:[#allocation9 + $0x28] sm:$0xff] }
 0x106   : > { %v5435_v60 = vor.u32 %v1249_v52, %v1246_v51  ;;  %1299 = vst [vmem:[#allocation4 + $0x10] sm:$0xf] %v1289_v57  ;;  %v1184_v2 = vrot.slane %v1183_v56, 4  ;;  %v4785_v4 = vld [vmem:[#allocation4 + $0x10] sm:$0xf0] }
 0x107   : > { %v1158_v5 = vld [vmem:[#allocation3 + $0x8] sm:$0xf]  ;;  %v4013_v9 = vor.u32 %v4785_v4, %v4012_v63 }
 0x108   : > { %v1251_v0 = vsel %vm5404_vm11, %v1242_v59, %v5435_v60  ;;  %v1164_v7 = vld [vmem:[#allocation3 + $0x8] sm:$0xf]  ;;  %1161 = vst [vmem:[#allocation4 + $0x28] sm:$0xf] %v1158_v5  ;;  %v1165_v10 = vld [vmem:[#allocation3 + $0xc] sm:$0x1] }
 0x109   : > { %1275 = vst [vmem:[#allocation4 + $0xc] sm:$0xf] %v1251_v0  ;;  %v1208_v8 = vld [vmem:[#allocation3 + $0x8] sm:$0xf]  ;;  %v1186_v11 = vshll.u32 %v1164_v7, 16  ;;  %v1190_v13 = vshrl.u32 %v1164_v7, 16  ;;  %1687 = vmatmul.bf16.vlgmr.msrb.gmra.mxu1 %v4013_v9 }
 0x10a   : > { %v1196_v15 = vshll.u32 %v1165_v10, 16  ;;  %v1209_v16 = vld [vmem:[#allocation3 + $0xc] sm:$0x1]  ;;  %v1219_v17 = vrot.slane %v1208_v8, 5  ;;  %v1232_v18 = vld [vmem:[#allocation3 + $0x8] sm:$0xf]  ;;  %1758 = vmatpush.bf16.msra.mxu1 %v4820_v53 }
 0x10b   : > { %v1188_v19 = vrot.slane %v1186_v11, 5  ;;  %v1192_v20 = vrot.slane %v1190_v13, 4  ;;  %v1222_v21 = vrot.slane %v1209_v16, 5  ;;  %v1233_v23 = vld [vmem:[#allocation3 + $0xc] sm:$0x3]  ;;  %v1254_v24 = vshrl.u32 %v1232_v18, 16 }
 0x10c   : > { %v1198_v25 = vrot.slane %v1196_v15, 5  ;;  %v1221_v26 = vrot.slane %v1219_v17, 4  ;;  %v1257_v27 = vshll.u32 %v1232_v18, 16  ;;  %v1264_v28 = vshrl.u32 %v1233_v23, 16  ;;  %v1280_v29 = vld [vmem:[#allocation3 + $0x8] sm:$0xf] }
 0x10d   : > { %v1193_v30 = vor.u32 %v1192_v20, %v1188_v19  ;;  %v1256_v31 = vrot.slane %v1254_v24, 5  ;;  %v1267_v32 = vshll.u32 %v1233_v23, 16  ;;  %v1281_v33 = vld [vmem:[#allocation3 + $0xc] sm:$0x3]  ;;  %v1291_v34 = vrot.slane %v1280_v29, 6  ;;  %v4848_v53 = vld [vmem:[#allocation9 + $0x78] sm:$0xff] }
 0x10e   : > { %v1223_v35 = vsel %vm5380_vm6, %v1221_v26, %v1222_v21  ;;  %v1259_v36 = vrot.slane %v1257_v27, 6  ;;  %v1266_v37 = vrot.slane %v1264_v28, 5  ;;  %v1294_v38 = vrot.slane %v1281_v33, 6  ;;  %v4020_v57 = vld [vmem:[#allocation4 + $0x8] sm:$0xf]  ;;  %2341 = vmatpush.bf16.msra.mxu3 %v4848_v53  ;;  %v4849_v53 = vld [vmem:[#allocation9 + $0x80] sm:$0xff] }
 0x10f   : > { %v1194_v39 = vrot.slane %v1193_v30, 4  ;;  %1229 = vst [vmem:[#allocation4 + $0x30] sm:$0xf] %v1223_v35  ;;  %v1269_v40 = vrot.slane %v1267_v32, 6  ;;  %v1292_v42 = vsel %vm5410_vm14, %v1290_v3, %v1291_v34  ;;  %v1293_v43 = vrot.slane %v1291_v34, 4  ;;  %v4840_v32 = vld [vmem:[#allocation9 + $0x38] sm:$0xff] }
 0x110   : > { %v1252_v45 = vrot.slane %v5435_v60, 4  ;;  %v1260_v46 = vor.u32 %v1259_v36, %v1256_v31  ;;  %1300 = vst [vmem:[#allocation4 + $0x24] sm:$0xf] %v1292_v42  ;;  %v1220_v47 = vsel %vm5380_vm6, %v1218_v62, %v1219_v17  ;;  %v1189_v48 = vsel %vm5390_vm10, %v1184_v2, %v1188_v19  ;;  %v4783_v61 = vld [vmem:[#allocation4 + $0x4] sm:$0xf]  ;;  %2323 = vmatpush.bf16.msra.mxu2 %v4840_v32  ;;  %v4860_v32 = vld [vmem:[#allocation9 + $0xd8] sm:$0xff] }
 0x111   : > { %v1199_v49 = vsel %vm5390_vm10, %v1194_v39, %v1198_v25  ;;  %v1270_v50 = vor.u32 %v1269_v40, %v1266_v37  ;;  %1228 = vst [vmem:[#allocation4 + $0x1c] sm:$0xf] %v1220_v47  ;;  %v1295_v54 = vsel %vm5410_vm14, %v1293_v43, %v1294_v38  ;;  %v4784_v1 = vld [vmem:[#allocation4 + $0xc] sm:$0xf]  ;;  %v4028_v14 = vld [vmem:[#allocation4 + $0x10] sm:$0xf] }
 0x112   : > { %v1262_v51 = vrot.slane %v1260_v46, 4  ;;  %1205 = vst [vmem:[#allocation4 + $0x2c] sm:$0xf] %v1199_v49  ;;  %v1261_v52 = vsel %vm5404_vm11, %v1252_v45, %v1260_v46  ;;  %v5036_v25 = vld [vmem:[%s5600_s7] ss:$0 sm:$0xff]  ;;  %v4839_v37 = vld [vmem:[#allocation9 + $0x30] sm:$0xff] }
 0x113   : > { %1204 = vst [vmem:[#allocation4 + $0x18] sm:$0xf] %v1189_v48  ;;  %v4856_v48 = vld [vmem:[#allocation9 + $0xb8] sm:$0xff] }
 0x114   : > { %v1271_v56 = vsel %vm5404_vm11, %v1262_v51, %v1270_v50  ;;  %1276 = vst [vmem:[#allocation4 + $0x20] sm:$0xf] %v1261_v52  ;;  %2324 = vmatpush.bf16.msra.mxu2 %v4839_v37  ;;  %v4837_v52 = vld [vmem:[#allocation9 + $0x20] sm:$0xff]  ;;  %2359 = vmatpush.bf16.msrb.mxu0 %v4856_v48  ;;  %v4871_v37 = vld [vmem:[#allocation9 + $0x130] sm:$0xff]  ;;  %v4870_v48 = vld [vmem:[#allocation9 + $0x128] sm:$0xff] }
 0x115   : > { %1277 = vst [vmem:[#allocation4 + $0x34] sm:$0xf] %v1271_v56 }
 0x116   : > { %1301 = vst [vmem:[#allocation4 + $0x38] sm:$0xf] %v1295_v54 }
 0x117   : > { %v4787_v11 = vld [vmem:[#allocation4 + $0x20] sm:$0xf0] }
 0x118   : > { %v4786_v58 = vld [vmem:[#allocation4 + $0x18] sm:$0xf0]  ;;  %v4029_v16 = vor.u32 %v4787_v11, %v4028_v14  ;;  %2325 = vmatpush.bf16.msra.mxu2 %v4838_v44  ;;  %v4862_v14 = vld [vmem:[#allocation9 + $0xe8] sm:$0xff] }
 0x119   : > { %v4021_v59 = vor.u32 %v4786_v58, %v4020_v57  ;;  %v1308_v60 = vld [vmem:[#allocation4 + $0x28] sm:$0xff] }
 0x11a   : > { %v4014_v62 = vld [vmem:[#allocation4 + $0x14] sm:$0xf0]  ;;  %v1414_v63 = vunpack.c.l.b16 %v1308_v60  ;;  %v1415_v8 = vunpack.c.h.b16 %v1308_v60 }
 0x11b   : > { %1723 = vmatmul.bf16.vlgmr.msrb.gmra.mxu3 %v4021_v59  ;;  %v4017_v0 = vor.u32 %v4783_v61, %v4014_v62  ;;  %v4022_v2 = vld [vmem:[#allocation4 + $0x1c] sm:$0xf0]  ;;  %v4855_v59 = vld [vmem:[#allocation9 + $0xb0] sm:$0xff]  ;;  %v4864_v60 = vld [vmem:[#allocation9 + $0xf8] sm:$0xff] }
 0x11c   : > { %v4025_v3 = vor.u32 %v4784_v1, %v4022_v2  ;;  %v1424_v4 = vpack.c.b16 %v1414_v63, %v1414_v63  ;;  %v1309_v5 = vld [vmem:[#allocation4 + $0x30] sm:$0xff]  ;;  %v1425_v13 = vpack.c.b16 %v1415_v8, %v1415_v8  ;;  %2326 = vmatpush.bf16.msra.mxu2 %v4837_v52  ;;  %2360 = vmatpush.bf16.msrb.mxu0 %v4855_v59 }
 0x11d   : > { %1705 = vmatmul.bf16.vlgmr.msrb.gmra.mxu2 %v4017_v0  ;;  %v1416_v7 = vunpack.c.l.b16 %v1309_v5  ;;  %v1417_v9 = vunpack.c.h.b16 %v1309_v5  ;;  %v1310_v17 = vld [vmem:[#allocation4 + $0x38] sm:$0xf]  ;;  %2377 = vmatpush.bf16.msrb.mxu1 %v4864_v60  ;;  %v4847_v63 = vld [vmem:[#allocation9 + $0x70] sm:$0xff]  ;;  %v4854_v0 = vld [vmem:[#allocation9 + $0xa8] sm:$0xff] }
 0x11e   : > { %1741 = vmatmul.bf16.vlgmr.msra.gmra.mxu0 %v4025_v3  ;;  %1692 = vmatmul.bf16.gmra.mxu1 %v1424_v4  ;;  %v1418_v18 = vunpack.c.l.b16 %v1310_v17  ;;  %v4836_v62 = vld [vmem:[#allocation9 + $0x18] sm:$0xff]  ;;  %v4863_v1 = vld [vmem:[#allocation9 + $0xf0] sm:$0xff] }
 0x11f   : > { %v1426_v10 = vpack.c.b16 %v1416_v7, %v1416_v7  ;;  %v1427_v15 = vpack.c.b16 %v1417_v9, %v1417_v9  ;;  %v4835_v5 = vld [vmem:[#allocation9 + $0x10] sm:$0xff]  ;;  %2342 = vmatpush.bf16.msra.mxu3 %v4847_v63  ;;  %v4846_v7 = vld [vmem:[#allocation9 + $0x68] sm:$0xff]  ;;  %v4857_v63 = vld [vmem:[#allocation9 + $0xc0] sm:$0xff] }
 0x120   : > { %v1428_v19 = vpack.c.b16 %v1418_v18, %v1418_v18  ;;  %2327 = vmatpush.bf16.msra.mxu2 %v4836_v62  ;;  %2361 = vmatpush.bf16.msrb.mxu0 %v4854_v0  ;;  %v4869_v62 = vld [vmem:[#allocation9 + $0x120] sm:$0xff] }
 0x121   : > { %2378 = vmatpush.bf16.msrb.mxu1 %v4863_v1 }
 0x123   : > { %2343 = vmatpush.bf16.msra.mxu3 %v4846_v7 }
 0x124   : > { %2328 = vmatpush.bf16.msra.mxu2 %v4835_v5 }
 0x125   : > { %2379 = vmatpush.bf16.msrb.mxu1 %v4862_v14 }
 0x12b   : > { %1728 = vmatmul.bf16.gmra.mxu3 %v1426_v10 }
 0x12d   : > { %1710 = vmatmul.bf16.gmra.mxu2 %v1425_v13  ;;  %v4853_v13 = vld [vmem:[#allocation9 + $0xa0] sm:$0xff] }
 0x12e   : > { %1746 = vmatmul.bf16.gmra.mxu0 %v1427_v15  ;;  %1759 = vmatmul.bf16.vlgmr.msra.gmra.mxu1 %v4029_v16  ;;  %v4834_v16 = vld [vmem:[#allocation9 + $0x8] sm:$0xff] }
 0x12f   : > { %2362 = vmatpush.bf16.msrb.mxu0 %v4853_v13  ;;  %2329 = vmatpush.bf16.msra.mxu2 %v4834_v16 }
 0x13e   : > { %1764 = vmatmul.bf16.gmra.mxu1 %v1428_v19  ;;  %v4845_v19 = vld [vmem:[#allocation9 + $0x60] sm:$0xff] }
 0x13f   : > { %2344 = vmatpush.bf16.msra.mxu3 %v4845_v19 }
 0x186   : > { %v1688_v20 = vpop.f32.mrf.mxu1 }
 0x187   : > { %v1689_v27 = vadd.f32 %v5036_v25, %v1688_v20 }
 0x18e   : > { %v1690_v21 = vpop.f32.mrf.mxu1 }
 0x18f   : > { %v1691_v35 = vadd.f32 %v5036_v25, %v1690_v21  ;;  %v4852_v21 = vld [vmem:[#allocation9 + $0x98] sm:$0xff] }
 0x190   : > { %2363 = vmatpush.bf16.msrb.mxu0 %v4852_v21 }
 0x19b   : > { %v1742_v23 = vpop.f32.mrf.mxu0  ;;  %v1693_v24 = vpop.f32.mrf.mxu1 }
 0x19c   : > { %v1694_v49 = vadd.f32 %v5036_v25, %v1693_v24  ;;  %v4833_v25 = vld [vmem:[#allocation9] sm:$0xff] }
 0x19d   : > { %2330 = vmatpush.bf16.msra.mxu2 %v4833_v25 }
 0x19e   : > { %v1724_v26 = vpop.f32.mrf.mxu3 }
 0x1a0   : > { %v1706_v28 = vpop.f32.mrf.mxu2 }
 0x1a1   : > { %v1707_v29 = vadd.f32 %v1706_v28, %v1689_v27  ;;  %v4872_v27 = vld [vmem:[#allocation9 + $0x138] sm:$0xff] }
 0x1a2   : > { %2395 = vmatpush.bf16.msrb.mxu2 %v4872_v27 }
 0x1a3   : > { %v1744_v30 = vpop.f32.mrf.mxu0  ;;  %v1695_v31 = vpop.f32.mrf.mxu1  ;;  %v1725_v33 = vadd.f32 %v1724_v26, %v1707_v29  ;;  %v4844_v26 = vld [vmem:[#allocation9 + $0x58] sm:$0xff] }
 0x1a4   : > { %v4851_v31 = vld [vmem:[#allocation9 + $0x90] sm:$0xff]  ;;  %2345 = vmatpush.bf16.msra.mxu3 %v4844_v26 }
 0x1a5   : > { %v1743_v39 = vadd.f32 %v1742_v23, %v1725_v33  ;;  %v4861_v23 = vld [vmem:[#allocation9 + $0xe0] sm:$0xff]  ;;  %2364 = vmatpush.bf16.msrb.mxu0 %v4851_v31 }
 0x1a6   : > { %v1726_v34 = vpop.f32.mrf.mxu3  ;;  %2380 = vmatpush.bf16.msrb.mxu1 %v4861_v23  ;;  %2396 = vmatpush.bf16.msrb.mxu2 %v4871_v37 }
 0x1a8   : > { %v1708_v36 = vpop.f32.mrf.mxu2 }
 0x1a9   : > { %v1709_v38 = vadd.f32 %v1708_v36, %v1691_v35  ;;  %v4843_v36 = vld [vmem:[#allocation9 + $0x50] sm:$0xff] }
 0x1aa   : > { %2381 = vmatpush.bf16.msrb.mxu1 %v4860_v32  ;;  %2346 = vmatpush.bf16.msra.mxu3 %v4843_v36 }
 0x1ab   : > { %v1747_v40 = vpop.f32.mrf.mxu0  ;;  %v1760_v42 = vpop.f32.mrf.mxu1  ;;  %v1727_v45 = vadd.f32 %v1726_v34, %v1709_v38  ;;  %2397 = vmatpush.bf16.msrb.mxu2 %v4870_v48 }
 0x1ac   : > { %v1761_v43 = vadd.f32 %v1760_v42, %v1743_v39  ;;  %v4850_v42 = vld [vmem:[#allocation9 + $0x88] sm:$0xff] }
 0x1ad   : > { %v1745_v56 = vadd.f32 %v1744_v30, %v1727_v45  ;;  %2365 = vmatpush.bf16.msrb.mxu0 %v4850_v42 }
 0x1ae   : > { %v1729_v46 = vpop.f32.mrf.mxu3  ;;  %v1769_v47 = vpack.c.bf16 %v1761_v43, %v1761_v43  ;;  %v4859_v43 = vld [vmem:[#allocation9 + $0xd0] sm:$0xff] }
 0x1af   : > { %2382 = vmatpush.bf16.msrb.mxu1 %v4859_v43  ;;  %2398 = vmatpush.bf16.msrb.mxu2 %v4869_v62 }
 0x1b0   : > { %v1711_v50 = vpop.f32.mrf.mxu2  ;;  %v1772_v51 = vunpack.c.l.bf16 %v1769_v47  ;;  %v4842_v47 = vld [vmem:[#allocation9 + $0x48] sm:$0xff] }
 0x1b1   : > { %v1712_v54 = vadd.f32 %v1711_v50, %v1694_v49  ;;  %2347 = vmatpush.bf16.msra.mxu3 %v4842_v47  ;;  %2366 = vmatpush.bf16.msrb.mxu0 %v4849_v53 }
 0x1b2   : > { %5046 = vtanh.f32 %v1772_v51 }
 0x1b3   : > { %v1749_v57 = vpop.f32.mrf.mxu0  ;;  %v1762_v58 = vpop.f32.mrf.mxu1  ;;  %v1730_v2 = vadd.f32 %v1729_v46, %v1712_v54  ;;  %v4858_v54 = vld [vmem:[#allocation9 + $0xc8] sm:$0xff] }
 0x1b4   : > { %v1763_v61 = vadd.f32 %v1762_v58, %v1745_v56  ;;  %2383 = vmatpush.bf16.msrb.mxu1 %v4858_v54 }
 0x1b5   : > { %v1748_v15 = vadd.f32 %v1747_v40, %v1730_v2 }
 0x1b6   : > { %v1731_v3 = vpop.f32.mrf.mxu3  ;;  %v1770_v4 = vpack.c.bf16 %v1763_v61, %v1763_v61  ;;  %v4841_v61 = vld [vmem:[#allocation9 + $0x40] sm:$0xff] }
 0x1b7   : > { %2348 = vmatpush.bf16.msra.mxu3 %v4841_v61 }
 0x1b8   : > { %v5047_v8 = vpop.eup %5046  ;;  %v1713_v9 = vpop.f32.mrf.mxu2  ;;  %v1773_v10 = vunpack.c.l.bf16 %v1770_v4  ;;  %2384 = vmatpush.bf16.msrb.mxu1 %v4857_v63 }
 0x1b9   : > { %v1778_v11 = vpack.c.bf16 %v5047_v8, %v5047_v8 }
 0x1ba   : > { %5048 = vtanh.f32 %v1773_v10 }
 0x1bb   : > { %v1784_v17 = vrot.slane %v1778_v11, 7  ;;  %v1765_v18 = vpop.f32.mrf.mxu1 }
 0x1bc   : > { %v1766_v20 = vadd.f32 %v1765_v18, %v1748_v15  ;;  %v4868_v18 = vld [vmem:[#allocation9 + $0x118] sm:$0xff] }
 0x1bd   : > { %1796 = vst [vmem:[#allocation2] sm:$0xe] %v1784_v17  ;;  %v1785_v33 = vrot.slane %v1784_v17, 4  ;;  %2399 = vmatpush.bf16.msrb.mxu2 %v4868_v18 }
 0x1be   : > { %v1771_v24 = vpack.c.bf16 %v1766_v20, %v1766_v20 }
 0x1c0   : > { %v5049_v28 = vpop.eup %5048  ;;  %v1774_v29 = vunpack.c.l.bf16 %v1771_v24 }
 0x1c1   : > { %v1779_v30 = vpack.c.bf16 %v5049_v28, %v5049_v28  ;;  %v4867_v28 = vld [vmem:[#allocation9 + $0x110] sm:$0xff] }
 0x1c2   : > { %5050 = vtanh.f32 %v1774_v29  ;;  %2400 = vmatpush.bf16.msrb.mxu2 %v4867_v28 }
 0x1c3   : > { %v1786_v34 = vrot.slane %v1779_v30, 7  ;;  %v1767_v35 = vpop.f32.mrf.mxu1 }
 0x1c4   : > { %v1800_v38 = vld [vmem:[#allocation2] sm:$0xf] }
 0x1c5   : > { %v1806_v39 = vld [vmem:[#allocation2] sm:$0xf]  ;;  %v1787_v40 = vsel %vm5372_vm2, %v1785_v33, %v1786_v34  ;;  %1803 = vst [vmem:[#allocation4] sm:$0xf] %v1800_v38  ;;  %v1788_v59 = vrot.slane %v1786_v34, 4 }
 0x1c6   : > { %v1811_v44 = vshrl.u32 %v1806_v39, 16  ;;  %1797 = vst [vmem:[#allocation2 + $0x4] sm:$0xf] %v1787_v40  ;;  %v1814_v45 = vshll.u32 %v1806_v39, 16  ;;  %v1874_v46 = vld [vmem:[#allocation2] sm:$0xe] }
 0x1c7   : > { %v1879_v50 = vshrl.u32 %v1874_v46, 16  ;;  %v1882_v51 = vshll.u32 %v1874_v46, 16  ;;  %v1850_v58 = vld [vmem:[#allocation2] sm:$0xe] }
 0x1c8   : > { %v5051_v49 = vpop.eup %5050  ;;  %v1813_v56 = vrot.slane %v1811_v44, 4  ;;  %v1816_v57 = vrot.slane %v1814_v45, 5  ;;  %v4190_v7 = vrot.slane %v1850_v58, 9  ;;  %v1922_v19 = vld [vmem:[#allocation2] sm:$0xc] }
 0x1c9   : > { %v1780_v52 = vpack.c.bf16 %v5051_v49, %v5051_v49  ;;  %v1881_v0 = vrot.slane %v1879_v50, 5  ;;  %v1884_v1 = vrot.slane %v1882_v51, 6  ;;  %v4191_v30 = vrot.slane %v1922_v19, 10  ;;  %v4866_v49 = vld [vmem:[#allocation9 + $0x108] sm:$0xff] }
 0x1ca   : > { %v1817_v8 = vor.u32 %v1816_v57, %v1813_v56  ;;  %2401 = vmatpush.bf16.msrb.mxu2 %v4866_v49 }
 0x1cb   : > { %v1789_v60 = vrot.slane %v1780_v52, 7  ;;  %v1885_v16 = vor.u32 %v1884_v1, %v1881_v0 }
 0x1cc   : > { %v1818_v21 = vrot.slane %v1817_v8, 4  ;;  %v4194_v36 = vld [vmem:[#allocation4] sm:$0xf] }
 0x1cd   : > { %v1875_v2 = vld [vmem:[#allocation2 + $0x4] sm:$0xf]  ;;  %v1790_v3 = vsel %vm5372_vm2, %v1788_v59, %v1789_v60  ;;  %v1791_v4 = vrot.slane %v1789_v60, 4  ;;  %v1886_v33 = vrot.slane %v1885_v16, 4 }
 0x1ce   : > { %v1801_v5 = vld [vmem:[#allocation2 + $0x4] sm:$0xf]  ;;  %1798 = vst [vmem:[#allocation2 + $0x8] sm:$0xf] %v1790_v3  ;;  %v1888_v15 = vshrl.u32 %v1875_v2, 16  ;;  %v1891_v17 = vshll.u32 %v1875_v2, 16 }
 0x1cf   : > { %v1851_v9 = vld [vmem:[#allocation2 + $0x4] sm:$0xf]  ;;  %1799 = vst [vmem:[#allocation2 + $0xc] sm:$0x1] %v1791_v4  ;;  %v4865_v3 = vld [vmem:[#allocation9 + $0x100] sm:$0xff] }
 0x1d0   : > { %v1807_v10 = vld [vmem:[#allocation2 + $0x4] sm:$0xf]  ;;  %v1860_v11 = vrot.slane %v1851_v9, 5  ;;  %1804 = vst [vmem:[#allocation4 + $0x14] sm:$0xf] %v1801_v5  ;;  %v1890_v25 = vrot.slane %v1888_v15, 5  ;;  %2402 = vmatpush.bf16.msrb.mxu2 %v4865_v3 }
 0x1d1   : > { %v1820_v13 = vshll.u32 %v1807_v10, 16  ;;  %v1824_v14 = vshrl.u32 %v1807_v10, 16  ;;  %v1893_v26 = vrot.slane %v1891_v17, 6  ;;  %v1923_v29 = vld [vmem:[#allocation2 + $0x4] sm:$0xf] }
 0x1d2   : > { %v1861_v20 = vsel %vm5380_vm6, %v4190_v7, %v1860_v11  ;;  %v1862_v31 = vrot.slane %v1860_v11, 4  ;;  %v1932_v44 = vrot.slane %v1923_v29, 6 }
 0x1d3   : > { %v1822_v23 = vrot.slane %v1820_v13, 5  ;;  %v1826_v24 = vrot.slane %v1824_v14, 4  ;;  %1871 = vst [vmem:[#allocation4 + $0x8] sm:$0xf] %v1861_v20  ;;  %v1894_v34 = vor.u32 %v1893_v26, %v1890_v25 }
 0x1d4   : > { %v1933_v63 = vsel %vm5410_vm14, %v4191_v30, %v1932_v44  ;;  %v1934_v8 = vrot.slane %v1932_v44, 4 }
 0x1d5   : > { %v1823_v27 = vsel %vm5390_vm10, %v1818_v21, %v1822_v23  ;;  %v1827_v32 = vor.u32 %v1826_v24, %v1822_v23  ;;  %v1876_v35 = vld [vmem:[#allocation2 + $0x8] sm:$0xf]  ;;  %v1895_v42 = vsel %vm5404_vm11, %v1886_v33, %v1894_v34  ;;  %v1896_v0 = vrot.slane %v1894_v34, 4  ;;  %1943 = vst [vmem:[#allocation4 + $0x10] sm:$0xf] %v1933_v63 }
 0x1d6   : > { %1847 = vst [vmem:[#allocation4 + $0x4] sm:$0xf] %v1823_v27  ;;  %v1852_v37 = vld [vmem:[#allocation2 + $0x8] sm:$0xf]  ;;  %v1898_v46 = vshrl.u32 %v1876_v35, 16  ;;  %v1901_v47 = vshll.u32 %v1876_v35, 16 }
 0x1d7   : > { %v1808_v38 = vld [vmem:[#allocation2 + $0x8] sm:$0xf]  ;;  %v1863_v39 = vrot.slane %v1852_v37, 5  ;;  %v4830_v45 = vld [vmem:[#allocation4 + $0x10] sm:$0xf0]  ;;  %v1828_v52 = vrot.slane %v1827_v32, 4 }
 0x1d8   : > { %v1830_v40 = vshll.u32 %v1808_v38, 16  ;;  %v1802_v43 = vld [vmem:[#allocation2 + $0x8] sm:$0xf]  ;;  %v1834_v48 = vshrl.u32 %v1808_v38, 16  ;;  %v4195_v50 = vor.u32 %v4830_v45, %v4194_v36  ;;  %1919 = vst [vmem:[#allocation4 + $0xc] sm:$0xf] %v1895_v42 }
 0x1d9   : > { %v1864_v51 = vsel %vm5380_vm6, %v1862_v31, %v1863_v39  ;;  %v1809_v54 = vld [vmem:[#allocation2 + $0xc] sm:$0x1]  ;;  %v1900_v56 = vrot.slane %v1898_v46, 5  ;;  %v1903_v57 = vrot.slane %v1901_v47, 6  ;;  %v1865_v58 = vrot.slane %v1863_v39, 4 }
 0x1da   : > { %v1832_v53 = vrot.slane %v1830_v40, 5  ;;  %1872 = vst [vmem:[#allocation4 + $0x1c] sm:$0xf] %v1864_v51  ;;  %2331 = vmatmul.bf16.vlgmr.msra.gmra.mxu2 %v4195_v50  ;;  %v1836_v60 = vrot.slane %v1834_v48, 4  ;;  %v1840_v61 = vshll.u32 %v1809_v54, 16 }
 0x1db   : > { %1805 = vst [vmem:[#allocation4 + $0x28] sm:$0xf] %v1802_v43  ;;  %v1853_v62 = vld [vmem:[#allocation2 + $0xc] sm:$0x1]  ;;  %v1904_v1 = vor.u32 %v1903_v57, %v1900_v56  ;;  %v1924_v7 = vld [vmem:[#allocation2 + $0x8] sm:$0xf] }
 0x1dc   : > { %v1833_v59 = vsel %vm5390_vm10, %v1828_v52, %v1832_v53  ;;  %v1866_v2 = vrot.slane %v1853_v62, 5  ;;  %v1837_v4 = vor.u32 %v1836_v60, %v1832_v53  ;;  %v1877_v5 = vld [vmem:[#allocation2 + $0xc] sm:$0x3]  ;;  %v1842_v10 = vrot.slane %v1840_v61, 5  ;;  %v4202_v21 = vld [vmem:[#allocation4 + $0x8] sm:$0xf] }
 0x1dd   : > { %1848 = vst [vmem:[#allocation4 + $0x18] sm:$0xf] %v1833_v59  ;;  %v1905_v9 = vsel %vm5404_vm11, %v1896_v0, %v1904_v1  ;;  %v1908_v13 = vshrl.u32 %v1877_v5, 16  ;;  %v1925_v14 = vld [vmem:[#allocation2 + $0xc] sm:$0x3]  ;;  %v1911_v16 = vshll.u32 %v1877_v5, 16 }
 0x1de   : > { %v1867_v11 = vsel %vm5380_vm6, %v1865_v58, %v1866_v2  ;;  %1920 = vst [vmem:[#allocation4 + $0x20] sm:$0xf] %v1905_v9  ;;  %v1838_v15 = vrot.slane %v1837_v4, 4  ;;  %v1935_v17 = vrot.slane %v1924_v7, 6  ;;  %v1938_v18 = vrot.slane %v1925_v14, 6  ;;  %v4885_v7 = vld [vmem:[#allocation10 + $0x38] sm:$0xff] }
 0x1df   : > { %1873 = vst [vmem:[#allocation4 + $0x30] sm:$0xf] %v1867_v11  ;;  %v1906_v19 = vrot.slane %v1904_v1, 4  ;;  %v1910_v20 = vrot.slane %v1908_v13, 5  ;;  %v1913_v25 = vrot.slane %v1911_v16, 6  ;;  %2967 = vmatpush.bf16.msrb.mxu3 %v4885_v7  ;;  %v4884_v13 = vld [vmem:[#allocation10 + $0x30] sm:$0xff] }
 0x1e0   : > { %v1843_v24 = vsel %vm5390_vm10, %v1838_v15, %v1842_v10  ;;  %v1936_v26 = vsel %vm5410_vm14, %v1934_v8, %v1935_v17  ;;  %v1937_v27 = vrot.slane %v1935_v17, 4  ;;  %v4828_v29 = vld [vmem:[#allocation4 + $0x4] sm:$0xf]  ;;  %v4829_v35 = vld [vmem:[#allocation4 + $0xc] sm:$0xf] }
 0x1e1   : > { %v4831_v23 = vld [vmem:[#allocation4 + $0x18] sm:$0xf0]  ;;  %1849 = vst [vmem:[#allocation4 + $0x2c] sm:$0xf] %v1843_v24  ;;  %v1914_v31 = vor.u32 %v1913_v25, %v1910_v20  ;;  %v4210_v50 = vld [vmem:[#allocation4 + $0x10] sm:$0xf] }
 0x1e2   : > { %v4203_v28 = vor.u32 %v4831_v23, %v4202_v21  ;;  %1944 = vst [vmem:[#allocation4 + $0x24] sm:$0xf] %v1936_v26  ;;  %v1939_v32 = vsel %vm5410_vm14, %v1937_v27, %v1938_v18  ;;  %v5037_v1 = vld [vmem:[%s5601_s8] ss:$0 sm:$0xff]  ;;  %v4883_v18 = vld [vmem:[#allocation10 + $0x28] sm:$0xff]  ;;  %v4901_v23 = vld [vmem:[#allocation10 + $0xb8] sm:$0xff] }
 0x1e3   : > { %1945 = vst [vmem:[#allocation4 + $0x38] sm:$0xf] %v1939_v32  ;;  %v1915_v34 = vsel %vm5404_vm11, %v1906_v19, %v1914_v31  ;;  %2968 = vmatpush.bf16.msrb.mxu3 %v4884_v13  ;;  %v4882_v26 = vld [vmem:[#allocation10 + $0x20] sm:$0xff]  ;;  %3003 = vmatpush.bf16.msra.mxu1 %v4901_v23  ;;  %v4893_v27 = vld [vmem:[#allocation10 + $0x78] sm:$0xff]  ;;  %v4903_v23 = vld [vmem:[#allocation10 + $0xc8] sm:$0xff] }
 0x1e4   : > { %v4196_v30 = vld [vmem:[#allocation4 + $0x14] sm:$0xf0]  ;;  %2367 = vmatmul.bf16.vlgmr.msrb.gmra.mxu0 %v4203_v28  ;;  %1921 = vst [vmem:[#allocation4 + $0x34] sm:$0xf] %v1915_v34 }
 0x1e5   : > { %v4199_v33 = vor.u32 %v4828_v29, %v4196_v30  ;;  %v4204_v36 = vld [vmem:[#allocation4 + $0x1c] sm:$0xf0]  ;;  %2985 = vmatpush.bf16.msra.mxu0 %v4893_v27  ;;  %v4900_v30 = vld [vmem:[#allocation10 + $0xb0] sm:$0xff]  ;;  %v4909_v31 = vld [vmem:[#allocation10 + $0xf8] sm:$0xff] }
 0x1e6   : > { %v4207_v37 = vor.u32 %v4829_v35, %v4204_v36  ;;  %v4881_v34 = vld [vmem:[#allocation10 + $0x18] sm:$0xff]  ;;  %3021 = vmatpush.bf16.msra.mxu2 %v4909_v31  ;;  %v4892_v36 = vld [vmem:[#allocation10 + $0x70] sm:$0xff]  ;;  %v4914_v31 = vld [vmem:[#allocation10 + $0x120] sm:$0xff] }
 0x1e7   : > { %2349 = vmatmul.bf16.vlgmr.msra.gmra.mxu3 %v4199_v33  ;;  %3004 = vmatpush.bf16.msra.mxu1 %v4900_v30 }
 0x1e8   : > { %2385 = vmatmul.bf16.vlgmr.msrb.gmra.mxu1 %v4207_v37  ;;  %v1952_v38 = vld [vmem:[#allocation4 + $0x28] sm:$0xff]  ;;  %2969 = vmatpush.bf16.msrb.mxu3 %v4883_v18 }
 0x1e9   : > { %v2058_v39 = vunpack.c.l.b16 %v1952_v38  ;;  %v2059_v44 = vunpack.c.h.b16 %v1952_v38  ;;  %v4832_v49 = vld [vmem:[#allocation4 + $0x20] sm:$0xf0]  ;;  %2986 = vmatpush.bf16.msra.mxu0 %v4892_v36 }
 0x1ea   : > { %v4211_v51 = vor.u32 %v4832_v49, %v4210_v50  ;;  %v1954_v52 = vld [vmem:[#allocation4 + $0x38] sm:$0xf]  ;;  %v4899_v38 = vld [vmem:[#allocation10 + $0xa8] sm:$0xff] }
 0x1eb   : > { %v2068_v40 = vpack.c.b16 %v2058_v39, %v2058_v39  ;;  %v1953_v42 = vld [vmem:[#allocation4 + $0x30] sm:$0xff]  ;;  %v2069_v47 = vpack.c.b16 %v2059_v44, %v2059_v44  ;;  %v2062_v53 = vunpack.c.l.b16 %v1954_v52  ;;  %v4891_v44 = vld [vmem:[#allocation10 + $0x68] sm:$0xff]  ;;  %3005 = vmatpush.bf16.msra.mxu1 %v4899_v38 }
 0x1ec   : > { %v2060_v43 = vunpack.c.l.b16 %v1953_v42  ;;  %v2061_v46 = vunpack.c.h.b16 %v1953_v42  ;;  %2970 = vmatpush.bf16.msrb.mxu3 %v4882_v26  ;;  %v4908_v39 = vld [vmem:[#allocation10 + $0xf0] sm:$0xff]  ;;  %v4879_v49 = vld [vmem:[#allocation10 + $0x8] sm:$0xff] }
 0x1ed   : > { %2336 = vmatmul.bf16.gmra.mxu2 %v2068_v40  ;;  %v2072_v54 = vpack.c.b16 %v2062_v53, %v2062_v53  ;;  %v4880_v40 = vld [vmem:[#allocation10 + $0x10] sm:$0xff]  ;;  %2987 = vmatpush.bf16.msra.mxu0 %v4891_v44 }
 0x1ee   : > { %v2070_v45 = vpack.c.b16 %v2060_v43, %v2060_v43  ;;  %v2071_v48 = vpack.c.b16 %v2061_v46, %v2061_v46  ;;  %3022 = vmatpush.bf16.msra.mxu2 %v4908_v39  ;;  %v4907_v46 = vld [vmem:[#allocation10 + $0xe8] sm:$0xff] }
 0x1f0   : > { %2971 = vmatpush.bf16.msrb.mxu3 %v4881_v34 }
 0x1f2   : > { %3023 = vmatpush.bf16.msra.mxu2 %v4907_v46 }
 0x1f4   : > { %2372 = vmatmul.bf16.gmra.mxu0 %v2070_v45  ;;  %v4898_v45 = vld [vmem:[#allocation10 + $0xa0] sm:$0xff]  ;;  %2972 = vmatpush.bf16.msrb.mxu3 %v4880_v40 }
 0x1f5   : > { %3006 = vmatpush.bf16.msra.mxu1 %v4898_v45 }
 0x1f7   : > { %2354 = vmatmul.bf16.gmra.mxu3 %v2069_v47 }
 0x1f8   : > { %2390 = vmatmul.bf16.gmra.mxu1 %v2071_v48  ;;  %2973 = vmatpush.bf16.msrb.mxu3 %v4879_v49 }
 0x1fd   : > { %2403 = vmatmul.bf16.vlgmr.msrb.gmra.mxu2 %v4211_v51  ;;  %v4890_v51 = vld [vmem:[#allocation10 + $0x60] sm:$0xff] }
 0x1fe   : > { %2988 = vmatpush.bf16.msra.mxu0 %v4890_v51 }
 0x20d   : > { %2408 = vmatmul.bf16.gmra.mxu2 %v2072_v54 }
 0x25d   : > { %v2332_v56 = vpop.f32.mrf.mxu2 }
 0x25e   : > { %v2333_v3 = vadd.f32 %v5037_v1, %v2332_v56  ;;  %v4897_v56 = vld [vmem:[#allocation10 + $0x98] sm:$0xff] }
 0x25f   : > { %3007 = vmatpush.bf16.msra.mxu1 %v4897_v56 }
 0x261   : > { %v2368_v57 = vpop.f32.mrf.mxu0 }
 0x265   : > { %v2386_v58 = vpop.f32.mrf.mxu1  ;;  %v2334_v59 = vpop.f32.mrf.mxu2 }
 0x266   : > { %v2335_v14 = vadd.f32 %v5037_v1, %v2334_v59  ;;  %v4878_v59 = vld [vmem:[#allocation10] sm:$0xff] }
 0x267   : > { %2974 = vmatpush.bf16.msrb.mxu3 %v4878_v59 }
 0x269   : > { %v2370_v61 = vpop.f32.mrf.mxu0 }
 0x26a   : > { %v2350_v60 = vpop.f32.mrf.mxu3 }
 0x26b   : > { %v2351_v5 = vadd.f32 %v2350_v60, %v2333_v3  ;;  %v4889_v60 = vld [vmem:[#allocation10 + $0x58] sm:$0xff] }
 0x26c   : > { %2989 = vmatpush.bf16.msra.mxu0 %v4889_v60 }
 0x26d   : > { %v2388_v62 = vpop.f32.mrf.mxu1  ;;  %v2369_v11 = vadd.f32 %v2368_v57, %v2351_v5  ;;  %v4906_v57 = vld [vmem:[#allocation10 + $0xe0] sm:$0xff]  ;;  %v4916_v5 = vld [vmem:[#allocation10 + $0x130] sm:$0xff] }
 0x26e   : > { %3024 = vmatpush.bf16.msra.mxu2 %v4906_v57 }
 0x26f   : > { %v2387_v17 = vadd.f32 %v2386_v58, %v2369_v11  ;;  %v4904_v11 = vld [vmem:[#allocation10 + $0xd0] sm:$0xff] }
 0x270   : > { %v2337_v63 = vpop.f32.mrf.mxu2 }
 0x271   : > { %v2373_v2 = vpop.f32.mrf.mxu0  ;;  %v2338_v28 = vadd.f32 %v5037_v1, %v2337_v63  ;;  %v4896_v63 = vld [vmem:[#allocation10 + $0x90] sm:$0xff] }
 0x272   : > { %v2352_v0 = vpop.f32.mrf.mxu3  ;;  %3008 = vmatpush.bf16.msra.mxu1 %v4896_v63 }
 0x273   : > { %v2353_v16 = vadd.f32 %v2352_v0, %v2335_v14  ;;  %v4905_v0 = vld [vmem:[#allocation10 + $0xd8] sm:$0xff] }
 0x274   : > { %3025 = vmatpush.bf16.msra.mxu2 %v4905_v0 }
 0x275   : > { %v2391_v4 = vpop.f32.mrf.mxu1  ;;  %v2371_v24 = vadd.f32 %v2370_v61, %v2353_v16  ;;  %v4917_v61 = vld [vmem:[#allocation10 + $0x138] sm:$0xff]  ;;  %v4887_v16 = vld [vmem:[#allocation10 + $0x48] sm:$0xff] }
 0x276   : > { %3039 = vmatpush.bf16.msra.mxu3 %v4917_v61 }
 0x277   : > { %v2389_v33 = vadd.f32 %v2388_v62, %v2371_v24 }
 0x278   : > { %v2339_v8 = vpop.f32.mrf.mxu2  ;;  %3026 = vmatpush.bf16.msra.mxu2 %v4904_v11 }
 0x279   : > { %v2375_v10 = vpop.f32.mrf.mxu0 }
 0x27a   : > { %v2355_v9 = vpop.f32.mrf.mxu3  ;;  %v4895_v10 = vld [vmem:[#allocation10 + $0x88] sm:$0xff]  ;;  %3040 = vmatpush.bf16.msra.mxu3 %v4916_v5 }
 0x27b   : > { %v2356_v32 = vadd.f32 %v2355_v9, %v2338_v28  ;;  %3009 = vmatpush.bf16.msra.mxu1 %v4895_v10  ;;  %v4886_v28 = vld [vmem:[#allocation10 + $0x40] sm:$0xff] }
 0x27c   : > { %3027 = vmatpush.bf16.msra.mxu2 %v4903_v23 }
 0x27d   : > { %v2393_v15 = vpop.f32.mrf.mxu1  ;;  %v2374_v42 = vadd.f32 %v2373_v2, %v2356_v32 }
 0x27f   : > { %v2392_v52 = vadd.f32 %v2391_v4, %v2374_v42  ;;  %v4888_v4 = vld [vmem:[#allocation10 + $0x50] sm:$0xff] }
 0x280   : > { %v2404_v19 = vpop.f32.mrf.mxu2  ;;  %2990 = vmatpush.bf16.msra.mxu0 %v4888_v4 }
 0x281   : > { %v2405_v21 = vadd.f32 %v2404_v19, %v2387_v17  ;;  %v4915_v17 = vld [vmem:[#allocation10 + $0x128] sm:$0xff] }
 0x282   : > { %v2357_v20 = vpop.f32.mrf.mxu3  ;;  %3041 = vmatpush.bf16.msra.mxu3 %v4915_v17 }
 0x283   : > { %v2413_v25 = vpack.c.bf16 %v2405_v21, %v2405_v21  ;;  %v4894_v21 = vld [vmem:[#allocation10 + $0x80] sm:$0xff] }
 0x284   : > { %2991 = vmatpush.bf16.msra.mxu0 %v4887_v16  ;;  %3010 = vmatpush.bf16.msra.mxu1 %v4894_v21  ;;  %v4911_v21 = vld [vmem:[#allocation10 + $0x108] sm:$0xff] }
 0x285   : > { %v2416_v29 = vunpack.c.l.bf16 %v2413_v25 }
 0x286   : > { %3042 = vmatpush.bf16.msra.mxu3 %v4914_v31 }
 0x287   : > { %5052 = vtanh.f32 %v2416_v29 }
 0x288   : > { %v2406_v35 = vpop.f32.mrf.mxu2  ;;  %2992 = vmatpush.bf16.msra.mxu0 %v4886_v28 }
 0x289   : > { %v2407_v37 = vadd.f32 %v2406_v35, %v2389_v33  ;;  %v4902_v35 = vld [vmem:[#allocation10 + $0xc0] sm:$0xff] }
 0x28a   : > { %3028 = vmatpush.bf16.msra.mxu2 %v4902_v35 }
 0x28b   : > { %v2414_v43 = vpack.c.bf16 %v2407_v37, %v2407_v37 }
 0x28d   : > { %v5053_v47 = vpop.eup %5052  ;;  %v2417_v48 = vunpack.c.l.bf16 %v2414_v43 }
 0x28e   : > { %v2422_v50 = vpack.c.bf16 %v5053_v47, %v5053_v47 }
 0x28f   : > { %5054 = vtanh.f32 %v2417_v48 }
 0x290   : > { %v2428_v53 = vrot.slane %v2422_v50, 7  ;;  %v2409_v54 = vpop.f32.mrf.mxu2 }
 0x291   : > { %v2410_v58 = vadd.f32 %v2409_v54, %v2392_v52 }
 0x292   : > { %2440 = vst [vmem:[#allocation3] sm:$0xe] %v2428_v53  ;;  %v2429_v7 = vrot.slane %v2428_v53, 4  ;;  %v4913_v53 = vld [vmem:[#allocation10 + $0x118] sm:$0xff] }
 0x293   : > { %v2415_v62 = vpack.c.bf16 %v2410_v58, %v2410_v58  ;;  %3043 = vmatpush.bf16.msra.mxu3 %v4913_v53 }
 0x295   : > { %v5055_v1 = vpop.eup %5054  ;;  %v2418_v2 = vunpack.c.l.bf16 %v2415_v62  ;;  %v4912_v62 = vld [vmem:[#allocation10 + $0x110] sm:$0xff] }
 0x296   : > { %v2423_v3 = vpack.c.bf16 %v5055_v1, %v5055_v1 }
 0x297   : > { %5056 = vtanh.f32 %v2418_v2  ;;  %3044 = vmatpush.bf16.msra.mxu3 %v4912_v62 }
 0x298   : > { %v2430_v8 = vrot.slane %v2423_v3, 7  ;;  %v2411_v9 = vpop.f32.mrf.mxu2 }
 0x299   : > { %v2444_v13 = vld [vmem:[#allocation3] sm:$0xf] }
 0x29a   : > { %v2450_v14 = vld [vmem:[#allocation3] sm:$0xf]  ;;  %v2431_v15 = vsel %vm5372_vm2, %v2429_v7, %v2430_v8  ;;  %2447 = vst [vmem:[#allocation4] sm:$0xf] %v2444_v13  ;;  %v2432_v33 = vrot.slane %v2430_v8, 4 }
 0x29b   : > { %v2455_v18 = vshrl.u32 %v2450_v14, 16  ;;  %2441 = vst [vmem:[#allocation3 + $0x4] sm:$0xf] %v2431_v15  ;;  %v2458_v19 = vshll.u32 %v2450_v14, 16  ;;  %v2518_v20 = vld [vmem:[#allocation3] sm:$0xe]  ;;  %3045 = vmatpush.bf16.msra.mxu3 %v4911_v21 }
 0x29c   : > { %v2523_v25 = vshrl.u32 %v2518_v20, 16  ;;  %v2526_v26 = vshll.u32 %v2518_v20, 16  ;;  %v2494_v32 = vld [vmem:[#allocation3] sm:$0xe] }
 0x29d   : > { %v5057_v24 = vpop.eup %5056  ;;  %v2457_v29 = vrot.slane %v2455_v18, 4  ;;  %v2460_v30 = vrot.slane %v2458_v19, 5  ;;  %v4372_v43 = vrot.slane %v2494_v32, 9  ;;  %v2566_v54 = vld [vmem:[#allocation3] sm:$0xc] }
 0x29e   : > { %v2424_v27 = vpack.c.bf16 %v5057_v24, %v5057_v24  ;;  %v2525_v36 = vrot.slane %v2523_v25, 5  ;;  %v2528_v37 = vrot.slane %v2526_v26, 6  ;;  %v4373_v1 = vrot.slane %v2566_v54, 10 }
 0x29f   : > { %v2461_v44 = vor.u32 %v2460_v30, %v2457_v29 }
 0x2a0   : > { %v2433_v34 = vrot.slane %v2424_v27, 7  ;;  %v2529_v51 = vor.u32 %v2528_v37, %v2525_v36 }
 0x2a1   : > { %v2462_v57 = vrot.slane %v2461_v44, 4  ;;  %v4376_v8 = vld [vmem:[#allocation4] sm:$0xf] }
 0x2a2   : > { %v2519_v38 = vld [vmem:[#allocation3 + $0x4] sm:$0xf]  ;;  %v2434_v39 = vsel %vm5372_vm2, %v2432_v33, %v2433_v34  ;;  %v2435_v40 = vrot.slane %v2433_v34, 4  ;;  %v2530_v4 = vrot.slane %v2529_v51, 4 }
 0x2a3   : > { %v2445_v42 = vld [vmem:[#allocation3 + $0x4] sm:$0xf]  ;;  %2442 = vst [vmem:[#allocation3 + $0x8] sm:$0xf] %v2434_v39  ;;  %v2532_v50 = vshrl.u32 %v2519_v38, 16  ;;  %v2535_v52 = vshll.u32 %v2519_v38, 16 }
 0x2a4   : > { %v2495_v45 = vld [vmem:[#allocation3 + $0x4] sm:$0xf]  ;;  %2443 = vst [vmem:[#allocation3 + $0xc] sm:$0x1] %v2435_v40  ;;  %v4910_v39 = vld [vmem:[#allocation10 + $0x100] sm:$0xff] }
 0x2a5   : > { %v2451_v46 = vld [vmem:[#allocation3 + $0x4] sm:$0xf]  ;;  %v2504_v47 = vrot.slane %v2495_v45, 5  ;;  %2448 = vst [vmem:[#allocation4 + $0x14] sm:$0xf] %v2445_v42  ;;  %v2534_v60 = vrot.slane %v2532_v50, 5  ;;  %3046 = vmatpush.bf16.msra.mxu3 %v4910_v39 }
 0x2a6   : > { %v2464_v48 = vshll.u32 %v2451_v46, 16  ;;  %v2468_v49 = vshrl.u32 %v2451_v46, 16  ;;  %v2537_v61 = vrot.slane %v2535_v52, 6  ;;  %v2567_v0 = vld [vmem:[#allocation3 + $0x4] sm:$0xf] }
 0x2a7   : > { %v2505_v56 = vsel %vm5380_vm6, %v4372_v43, %v2504_v47  ;;  %v2506_v2 = vrot.slane %v2504_v47, 4  ;;  %v2576_v16 = vrot.slane %v2567_v0, 6 }
 0x2a8   : > { %v2466_v58 = vrot.slane %v2464_v48, 5  ;;  %v2470_v59 = vrot.slane %v2468_v49, 4  ;;  %2515 = vst [vmem:[#allocation4 + $0x8] sm:$0xf] %v2505_v56  ;;  %v2538_v5 = vor.u32 %v2537_v61, %v2534_v60 }
 0x2a9   : > { %v2577_v35 = vsel %vm5410_vm14, %v4373_v1, %v2576_v16  ;;  %v2578_v44 = vrot.slane %v2576_v16, 4 }
 0x2aa   : > { %v2467_v63 = vsel %vm5390_vm10, %v2462_v57, %v2466_v58  ;;  %v2471_v3 = vor.u32 %v2470_v59, %v2466_v58  ;;  %v2520_v7 = vld [vmem:[#allocation3 + $0x8] sm:$0xf]  ;;  %v2539_v14 = vsel %vm5404_vm11, %v2530_v4, %v2538_v5  ;;  %v2540_v36 = vrot.slane %v2538_v5, 4  ;;  %2587 = vst [vmem:[#allocation4 + $0x10] sm:$0xf] %v2577_v35 }
 0x2ab   : > { %2491 = vst [vmem:[#allocation4 + $0x4] sm:$0xf] %v2467_v63  ;;  %v2496_v9 = vld [vmem:[#allocation3 + $0x8] sm:$0xf]  ;;  %v2542_v18 = vshrl.u32 %v2520_v7, 16  ;;  %v2545_v19 = vshll.u32 %v2520_v7, 16 }
 0x2ac   : > { %v2452_v10 = vld [vmem:[#allocation3 + $0x8] sm:$0xf]  ;;  %v2507_v11 = vrot.slane %v2496_v9, 5  ;;  %v4875_v17 = vld [vmem:[#allocation4 + $0x10] sm:$0xf0]  ;;  %v2472_v25 = vrot.slane %v2471_v3, 4 }
 0x2ad   : > { %v2474_v13 = vshll.u32 %v2452_v10, 16  ;;  %v2446_v15 = vld [vmem:[#allocation3 + $0x8] sm:$0xf]  ;;  %v2478_v20 = vshrl.u32 %v2452_v10, 16  ;;  %v4377_v23 = vor.u32 %v4875_v17, %v4376_v8  ;;  %2563 = vst [vmem:[#allocation4 + $0xc] sm:$0xf] %v2539_v14 }
 0x2ae   : > { %v2508_v24 = vsel %vm5380_vm6, %v2506_v2, %v2507_v11  ;;  %v2453_v27 = vld [vmem:[#allocation3 + $0xc] sm:$0x1]  ;;  %v2544_v28 = vrot.slane %v2542_v18, 5  ;;  %v2547_v29 = vrot.slane %v2545_v19, 6  ;;  %v2509_v30 = vrot.slane %v2507_v11, 4 }
 0x2af   : > { %v2476_v26 = vrot.slane %v2474_v13, 5  ;;  %2516 = vst [vmem:[#allocation4 + $0x1c] sm:$0xf] %v2508_v24  ;;  %2975 = vmatmul.bf16.vlgmr.msrb.gmra.mxu3 %v4377_v23  ;;  %v2480_v32 = vrot.slane %v2478_v20, 4  ;;  %v2484_v33 = vshll.u32 %v2453_v27, 16 }
 0x2b0   : > { %2449 = vst [vmem:[#allocation4 + $0x28] sm:$0xf] %v2446_v15  ;;  %v2497_v34 = vld [vmem:[#allocation3 + $0xc] sm:$0x1]  ;;  %v2548_v37 = vor.u32 %v2547_v29, %v2544_v28  ;;  %v2568_v43 = vld [vmem:[#allocation3 + $0x8] sm:$0xf] }
 0x2b1   : > { %v2477_v31 = vsel %vm5390_vm10, %v2472_v25, %v2476_v26  ;;  %v2510_v38 = vrot.slane %v2497_v34, 5  ;;  %v2481_v40 = vor.u32 %v2480_v32, %v2476_v26  ;;  %v2521_v42 = vld [vmem:[#allocation3 + $0xc] sm:$0x3]  ;;  %v2486_v46 = vrot.slane %v2484_v33, 5  ;;  %v4384_v57 = vld [vmem:[#allocation4 + $0x8] sm:$0xf] }
 0x2b2   : > { %2492 = vst [vmem:[#allocation4 + $0x18] sm:$0xf] %v2477_v31  ;;  %v2549_v45 = vsel %vm5404_vm11, %v2540_v36, %v2548_v37  ;;  %v2552_v48 = vshrl.u32 %v2521_v42, 16  ;;  %v2569_v49 = vld [vmem:[#allocation3 + $0xc] sm:$0x3]  ;;  %v2555_v51 = vshll.u32 %v2521_v42, 16 }
 0x2b3   : > { %v2511_v47 = vsel %vm5380_vm6, %v2509_v30, %v2510_v38  ;;  %2564 = vst [vmem:[#allocation4 + $0x20] sm:$0xf] %v2549_v45  ;;  %v2482_v50 = vrot.slane %v2481_v40, 4  ;;  %v2579_v52 = vrot.slane %v2568_v43, 6  ;;  %v2582_v53 = vrot.slane %v2569_v49, 6  ;;  %v4930_v40 = vld [vmem:[#allocation12 + $0x38] sm:$0xff] }
 0x2b4   : > { %2517 = vst [vmem:[#allocation4 + $0x30] sm:$0xf] %v2511_v47  ;;  %v2550_v54 = vrot.slane %v2548_v37, 4  ;;  %v2554_v56 = vrot.slane %v2552_v48, 5  ;;  %v2557_v60 = vrot.slane %v2555_v51, 6  ;;  %3611 = vmatpush.bf16.msrb.mxu0 %v4930_v40  ;;  %v4929_v47 = vld [vmem:[#allocation12 + $0x30] sm:$0xff] }
 0x2b5   : > { %v2487_v59 = vsel %vm5390_vm10, %v2482_v50, %v2486_v46  ;;  %v2580_v61 = vsel %vm5410_vm14, %v2578_v44, %v2579_v52  ;;  %v2581_v62 = vrot.slane %v2579_v52, 4  ;;  %v4873_v0 = vld [vmem:[#allocation4 + $0x4] sm:$0xf]  ;;  %v4874_v7 = vld [vmem:[#allocation4 + $0xc] sm:$0xf] }
 0x2b6   : > { %v4876_v58 = vld [vmem:[#allocation4 + $0x18] sm:$0xf0]  ;;  %2493 = vst [vmem:[#allocation4 + $0x2c] sm:$0xf] %v2487_v59  ;;  %v2558_v2 = vor.u32 %v2557_v60, %v2554_v56  ;;  %v4392_v23 = vld [vmem:[#allocation4 + $0x10] sm:$0xf] }
 0x2b7   : > { %v4385_v63 = vor.u32 %v4876_v58, %v4384_v57  ;;  %2588 = vst [vmem:[#allocation4 + $0x24] sm:$0xf] %v2580_v61  ;;  %v2583_v3 = vsel %vm5410_vm14, %v2581_v62, %v2582_v53  ;;  %v5038_v38 = vld [vmem:[%s5602_s9] ss:$0 sm:$0xff]  ;;  %v4928_v50 = vld [vmem:[#allocation12 + $0x28] sm:$0xff]  ;;  %v4946_v57 = vld [vmem:[#allocation12 + $0xb8] sm:$0xff] }
 0x2b8   : > { %2589 = vst [vmem:[#allocation4 + $0x38] sm:$0xf] %v2583_v3  ;;  %v2559_v5 = vsel %vm5404_vm11, %v2550_v54, %v2558_v2  ;;  %3612 = vmatpush.bf16.msrb.mxu0 %v4929_v47  ;;  %v4927_v58 = vld [vmem:[#allocation12 + $0x20] sm:$0xff]  ;;  %3647 = vmatpush.bf16.msrb.mxu2 %v4946_v57  ;;  %v4938_v61 = vld [vmem:[#allocation12 + $0x78] sm:$0xff]  ;;  %v4945_v62 = vld [vmem:[#allocation12 + $0xb0] sm:$0xff] }
 0x2b9   : > { %v4378_v1 = vld [vmem:[#allocation4 + $0x14] sm:$0xf0]  ;;  %3011 = vmatmul.bf16.vlgmr.msra.gmra.mxu1 %v4385_v63  ;;  %2565 = vst [vmem:[#allocation4 + $0x34] sm:$0xf] %v2559_v5  ;;  %v4937_v3 = vld [vmem:[#allocation12 + $0x70] sm:$0xff] }
 0x2ba   : > { %v4381_v4 = vor.u32 %v4873_v0, %v4378_v1  ;;  %v4386_v8 = vld [vmem:[#allocation4 + $0x1c] sm:$0xf0]  ;;  %v4954_v63 = vld [vmem:[#allocation12 + $0xf8] sm:$0xff]  ;;  %3629 = vmatpush.bf16.msrb.mxu1 %v4938_v61  ;;  %v5527_v40 = vld [vmem:[#allocation12 + $0x130] sm:$0xff] }
 0x2bb   : > { %v4389_v9 = vor.u32 %v4874_v7, %v4386_v8  ;;  %v4926_v0 = vld [vmem:[#allocation12 + $0x18] sm:$0xff]  ;;  %3665 = vmatpush.bf16.msrb.mxu3 %v4954_v63  ;;  %v4944_v8 = vld [vmem:[#allocation12 + $0xa8] sm:$0xff]  ;;  %v5535_v63 = vld [vmem:[#allocation12 + $0x120] sm:$0xff] }
 0x2bc   : > { %2993 = vmatmul.bf16.vlgmr.msra.gmra.mxu0 %v4381_v4  ;;  %v4953_v4 = vld [vmem:[#allocation12 + $0xf0] sm:$0xff]  ;;  %3648 = vmatpush.bf16.msrb.mxu2 %v4945_v62 }
 0x2bd   : > { %3029 = vmatmul.bf16.vlgmr.msra.gmra.mxu2 %v4389_v9  ;;  %v2596_v10 = vld [vmem:[#allocation4 + $0x28] sm:$0xff]  ;;  %3613 = vmatpush.bf16.msrb.mxu0 %v4928_v50 }
 0x2be   : > { %v2702_v11 = vunpack.c.l.b16 %v2596_v10  ;;  %v2703_v16 = vunpack.c.h.b16 %v2596_v10  ;;  %v4877_v21 = vld [vmem:[#allocation4 + $0x20] sm:$0xf0]  ;;  %v4925_v10 = vld [vmem:[#allocation12 + $0x10] sm:$0xff]  ;;  %3630 = vmatpush.bf16.msrb.mxu1 %v4937_v3 }
 0x2bf   : > { %v4393_v24 = vor.u32 %v4877_v21, %v4392_v23  ;;  %v2598_v25 = vld [vmem:[#allocation4 + $0x38] sm:$0xf]  ;;  %3666 = vmatpush.bf16.msrb.mxu3 %v4953_v4  ;;  %v4935_v23 = vld [vmem:[#allocation12 + $0x60] sm:$0xff]  ;;  %v5530_v50 = vld [vmem:[#allocation12 + $0x128] sm:$0xff] }
 0x2c0   : > { %v2712_v13 = vpack.c.b16 %v2702_v11, %v2702_v11  ;;  %v2597_v14 = vld [vmem:[#allocation4 + $0x30] sm:$0xff]  ;;  %v2713_v19 = vpack.c.b16 %v2703_v16, %v2703_v16  ;;  %v2706_v26 = vunpack.c.l.b16 %v2598_v25  ;;  %3649 = vmatpush.bf16.msrb.mxu2 %v4944_v8  ;;  %v4951_v25 = vld [vmem:[#allocation12 + $0xe0] sm:$0xff] }
 0x2c1   : > { %v2704_v15 = vunpack.c.l.b16 %v2597_v14  ;;  %v2705_v18 = vunpack.c.h.b16 %v2597_v14  ;;  %3614 = vmatpush.bf16.msrb.mxu0 %v4927_v58  ;;  %v4936_v14 = vld [vmem:[#allocation12 + $0x68] sm:$0xff] }
 0x2c2   : > { %2980 = vmatmul.bf16.gmra.mxu3 %v2712_v13  ;;  %v2716_v27 = vpack.c.b16 %v2706_v26, %v2706_v26  ;;  %3631 = vmatpush.bf16.msrb.mxu1 %v4936_v14 }
 0x2c3   : > { %v2714_v17 = vpack.c.b16 %v2704_v15, %v2704_v15  ;;  %v2715_v20 = vpack.c.b16 %v2705_v18, %v2705_v18  ;;  %v4952_v15 = vld [vmem:[#allocation12 + $0xe8] sm:$0xff] }
 0x2c4   : > { %v4924_v18 = vld [vmem:[#allocation12 + $0x8] sm:$0xff]  ;;  %3667 = vmatpush.bf16.msrb.mxu3 %v4952_v15 }
 0x2c5   : > { %3615 = vmatpush.bf16.msrb.mxu0 %v4926_v0 }
 0x2c6   : > { %3632 = vmatpush.bf16.msrb.mxu1 %v4935_v23 }
 0x2c8   : > { %3668 = vmatpush.bf16.msrb.mxu3 %v4951_v25 }
 0x2c9   : > { %3016 = vmatmul.bf16.gmra.mxu1 %v2714_v17  ;;  %v4943_v17 = vld [vmem:[#allocation12 + $0xa0] sm:$0xff]  ;;  %3616 = vmatpush.bf16.msrb.mxu0 %v4925_v10 }
 0x2ca   : > { %3650 = vmatpush.bf16.msrb.mxu2 %v4943_v17 }
 0x2cc   : > { %2998 = vmatmul.bf16.gmra.mxu0 %v2713_v19 }
 0x2cd   : > { %3034 = vmatmul.bf16.gmra.mxu2 %v2715_v20  ;;  %3617 = vmatpush.bf16.msrb.mxu0 %v4924_v18 }
 0x2d2   : > { %3047 = vmatmul.bf16.vlgmr.msra.gmra.mxu3 %v4393_v24 }
 0x2e2   : > { %3052 = vmatmul.bf16.gmra.mxu3 %v2716_v27  ;;  %v4942_v27 = vld [vmem:[#allocation12 + $0x98] sm:$0xff] }
 0x2e3   : > { %3651 = vmatpush.bf16.msrb.mxu2 %v4942_v27 }
 0x332   : > { %v2976_v28 = vpop.f32.mrf.mxu3 }
 0x333   : > { %v2977_v42 = vadd.f32 %v5038_v38, %v2976_v28 }
 0x336   : > { %v3012_v29 = vpop.f32.mrf.mxu1 }
 0x339   : > { %v2994_v30 = vpop.f32.mrf.mxu0 }
 0x33a   : > { %v2978_v31 = vpop.f32.mrf.mxu3  ;;  %v2995_v45 = vadd.f32 %v2994_v30, %v2977_v42  ;;  %v4923_v30 = vld [vmem:[#allocation12] sm:$0xff] }
 0x33b   : > { %v2979_v51 = vadd.f32 %v5038_v38, %v2978_v31  ;;  %3618 = vmatpush.bf16.msrb.mxu0 %v4923_v30 }
 0x33c   : > { %v3013_v49 = vadd.f32 %v3012_v29, %v2995_v45 }
 0x33e   : > { %v3014_v32 = vpop.f32.mrf.mxu1 }
 0x340   : > { %v3030_v34 = vpop.f32.mrf.mxu2 }
 0x341   : > { %v2996_v33 = vpop.f32.mrf.mxu0  ;;  %v3031_v52 = vadd.f32 %v3030_v34, %v3013_v49  ;;  %v4950_v34 = vld [vmem:[#allocation12 + $0xd8] sm:$0xff] }
 0x342   : > { %v2997_v54 = vadd.f32 %v2996_v33, %v2979_v51  ;;  %v5524_v33 = vld [vmem:[#allocation12 + $0x138] sm:$0xff]  ;;  %3669 = vmatpush.bf16.msrb.mxu3 %v4950_v34 }
 0x343   : > { %3683 = vmatpush.bf16.msra.mxu0 %v5524_v33 }
 0x344   : > { %v3015_v1 = vadd.f32 %v3014_v32, %v2997_v54  ;;  %v4934_v32 = vld [vmem:[#allocation12 + $0x58] sm:$0xff] }
 0x345   : > { %v2981_v35 = vpop.f32.mrf.mxu3  ;;  %3633 = vmatpush.bf16.msrb.mxu1 %v4934_v32 }
 0x346   : > { %v3017_v36 = vpop.f32.mrf.mxu1  ;;  %v2982_v5 = vadd.f32 %v5038_v38, %v2981_v35 }
 0x347   : > { %3684 = vmatpush.bf16.msra.mxu0 %v5527_v40 }
 0x348   : > { %v3032_v39 = vpop.f32.mrf.mxu2 }
 0x349   : > { %v2999_v37 = vpop.f32.mrf.mxu0  ;;  %v3033_v7 = vadd.f32 %v3032_v39, %v3015_v1  ;;  %v4933_v39 = vld [vmem:[#allocation12 + $0x50] sm:$0xff]  ;;  %v4947_v1 = vld [vmem:[#allocation12 + $0xc0] sm:$0xff] }
 0x34a   : > { %v3000_v11 = vadd.f32 %v2999_v37, %v2982_v5  ;;  %3634 = vmatpush.bf16.msrb.mxu1 %v4933_v39  ;;  %v5554_v39 = vld [vmem:[#allocation12 + $0x108] sm:$0xff] }
 0x34b   : > { %3685 = vmatpush.bf16.msra.mxu0 %v5530_v50 }
 0x34c   : > { %v3018_v20 = vadd.f32 %v3017_v36, %v3000_v11  ;;  %v4941_v36 = vld [vmem:[#allocation12 + $0x90] sm:$0xff] }
 0x34d   : > { %v2983_v43 = vpop.f32.mrf.mxu3  ;;  %3652 = vmatpush.bf16.msrb.mxu2 %v4941_v36 }
 0x34e   : > { %v3019_v44 = vpop.f32.mrf.mxu1  ;;  %v4949_v43 = vld [vmem:[#allocation12 + $0xd0] sm:$0xff] }
 0x34f   : > { %v4940_v44 = vld [vmem:[#allocation12 + $0x88] sm:$0xff]  ;;  %3670 = vmatpush.bf16.msrb.mxu3 %v4949_v43  ;;  %3686 = vmatpush.bf16.msra.mxu0 %v5535_v63 }
 0x350   : > { %v3035_v48 = vpop.f32.mrf.mxu2 }
 0x351   : > { %v3001_v46 = vpop.f32.mrf.mxu0  ;;  %v3036_v26 = vadd.f32 %v3035_v48, %v3018_v20  ;;  %v4932_v48 = vld [vmem:[#allocation12 + $0x48] sm:$0xff]  ;;  %3653 = vmatpush.bf16.msrb.mxu2 %v4940_v44 }
 0x352   : > { %3635 = vmatpush.bf16.msrb.mxu1 %v4932_v48 }
 0x355   : > { %v3048_v53 = vpop.f32.mrf.mxu3 }
 0x356   : > { %v3049_v56 = vadd.f32 %v3048_v53, %v3031_v52  ;;  %v4948_v53 = vld [vmem:[#allocation12 + $0xc8] sm:$0xff] }
 0x357   : > { %3671 = vmatpush.bf16.msrb.mxu3 %v4948_v53 }
 0x358   : > { %v3057_v59 = vpack.c.bf16 %v3049_v56, %v3049_v56  ;;  %v3037_v60 = vpop.f32.mrf.mxu2  ;;  %v4939_v56 = vld [vmem:[#allocation12 + $0x80] sm:$0xff] }
 0x359   : > { %v4931_v60 = vld [vmem:[#allocation12 + $0x40] sm:$0xff]  ;;  %3654 = vmatpush.bf16.msrb.mxu2 %v4939_v56 }
 0x35a   : > { %v3060_v2 = vunpack.c.l.bf16 %v3057_v59  ;;  %3636 = vmatpush.bf16.msrb.mxu1 %v4931_v60 }
 0x35b   : > { %3672 = vmatpush.bf16.msrb.mxu3 %v4947_v1 }
 0x35c   : > { %5058 = vtanh.f32 %v3060_v2 }
 0x35d   : > { %v3050_v9 = vpop.f32.mrf.mxu3 }
 0x35e   : > { %v3051_v13 = vadd.f32 %v3050_v9, %v3033_v7  ;;  %4963 = vmatpush.bf16.msra.mxu1 %v5524_v33 }
 0x360   : > { %v3058_v16 = vpack.c.bf16 %v3051_v13, %v3051_v13 }
 0x362   : > { %v5059_v19 = vpop.eup %5058  ;;  %v3061_v21 = vunpack.c.l.bf16 %v3058_v16  ;;  %4964 = vmatpush.bf16.msra.mxu1 %v5527_v40 }
 0x363   : > { %v3066_v24 = vpack.c.bf16 %v5059_v19, %v5059_v19  ;;  %v5541_v19 = vld [vmem:[#allocation12 + $0x118] sm:$0xff] }
 0x364   : > { %5060 = vtanh.f32 %v3061_v21  ;;  %3687 = vmatpush.bf16.msra.mxu0 %v5541_v19 }
 0x365   : > { %v3072_v28 = vrot.slane %v3066_v24, 7  ;;  %v3053_v29 = vpop.f32.mrf.mxu3 }
 0x366   : > { %v3054_v31 = vadd.f32 %v3053_v29, %v3036_v26  ;;  %4965 = vmatpush.bf16.msra.mxu1 %v5530_v50 }
 0x367   : > { %3084 = vst [vmem:[#allocation2] sm:$0xe] %v3072_v28  ;;  %v3073_v45 = vrot.slane %v3072_v28, 4  ;;  %v5546_v28 = vld [vmem:[#allocation12 + $0x110] sm:$0xff] }
 0x368   : > { %v3059_v35 = vpack.c.bf16 %v3054_v31, %v3054_v31  ;;  %3688 = vmatpush.bf16.msra.mxu0 %v5546_v28 }
 0x36a   : > { %v5061_v37 = vpop.eup %5060  ;;  %v3062_v38 = vunpack.c.l.bf16 %v3059_v35  ;;  %4966 = vmatpush.bf16.msra.mxu1 %v5535_v63 }
 0x36b   : > { %v3067_v42 = vpack.c.bf16 %v5061_v37, %v5061_v37 }
 0x36c   : > { %5062 = vtanh.f32 %v3062_v38  ;;  %3689 = vmatpush.bf16.msra.mxu0 %v5554_v39 }
 0x36d   : > { %v3074_v46 = vrot.slane %v3067_v42, 7  ;;  %v3055_v47 = vpop.f32.mrf.mxu3 }
 0x36e   : > { %v3088_v49 = vld [vmem:[#allocation2] sm:$0xf]  ;;  %4967 = vmatpush.bf16.msra.mxu1 %v5541_v19 }
 0x36f   : > { %v3094_v51 = vld [vmem:[#allocation2] sm:$0xf]  ;;  %v3075_v52 = vsel %vm5372_vm2, %v3073_v45, %v3074_v46  ;;  %3091 = vst [vmem:[#allocation4] sm:$0xf] %v3088_v49  ;;  %v3076_v5 = vrot.slane %v3074_v46, 4 }
 0x370   : > { %v3099_v54 = vshrl.u32 %v3094_v51, 16  ;;  %3085 = vst [vmem:[#allocation2 + $0x4] sm:$0xf] %v3075_v52  ;;  %v3102_v57 = vshll.u32 %v3094_v51, 16  ;;  %v3162_v58 = vld [vmem:[#allocation2] sm:$0xe] }
 0x371   : > { %v3167_v61 = vshrl.u32 %v3162_v58, 16  ;;  %v3170_v62 = vshll.u32 %v3162_v58, 16  ;;  %v3138_v4 = vld [vmem:[#allocation2] sm:$0xe] }
 0x372   : > { %v5063_v59 = vpop.eup %5062  ;;  %v3101_v2 = vrot.slane %v3099_v54, 4  ;;  %v3104_v3 = vrot.slane %v3102_v57, 5  ;;  %v4554_v15 = vrot.slane %v3138_v4, 9  ;;  %v3210_v24 = vld [vmem:[#allocation2] sm:$0xc]  ;;  %4968 = vmatpush.bf16.msra.mxu1 %v5546_v28 }
 0x373   : > { %v3068_v0 = vpack.c.bf16 %v5063_v59, %v5063_v59  ;;  %v3169_v8 = vrot.slane %v3167_v61, 5  ;;  %v3172_v9 = vrot.slane %v3170_v62, 6  ;;  %v4555_v42 = vrot.slane %v3210_v24, 10 }
 0x374   : > { %v3105_v16 = vor.u32 %v3104_v3, %v3101_v2 }
 0x375   : > { %v3077_v7 = vrot.slane %v3068_v0, 7  ;;  %v3173_v25 = vor.u32 %v3172_v9, %v3169_v8 }
 0x376   : > { %v3106_v29 = vrot.slane %v3105_v16, 4  ;;  %v4558_v43 = vld [vmem:[#allocation4] sm:$0xf]  ;;  %4969 = vmatpush.bf16.msra.mxu1 %v5554_v39 }
 0x377   : > { %v3078_v10 = vsel %vm5372_vm2, %v3076_v5, %v3077_v7  ;;  %v3079_v11 = vrot.slane %v3077_v7, 4  ;;  %v3089_v13 = vld [vmem:[#allocation2 + $0x4] sm:$0xf]  ;;  %v3174_v37 = vrot.slane %v3173_v25, 4 }
 0x378   : > { %v3139_v14 = vld [vmem:[#allocation2 + $0x4] sm:$0xf]  ;;  %3086 = vst [vmem:[#allocation2 + $0x8] sm:$0xf] %v3078_v10 }
 0x379   : > { %v3148_v17 = vrot.slane %v3139_v14, 5  ;;  %v3095_v18 = vld [vmem:[#allocation2 + $0x4] sm:$0xf]  ;;  %3087 = vst [vmem:[#allocation2 + $0xc] sm:$0x1] %v3079_v11  ;;  %v4955_v14 = vld [vmem:[#allocation12 + $0x100] sm:$0xff] }
 0x37a   : > { %v3108_v20 = vshll.u32 %v3095_v18, 16  ;;  %v3112_v21 = vshrl.u32 %v3095_v18, 16  ;;  %v3163_v23 = vld [vmem:[#allocation2 + $0x4] sm:$0xf]  ;;  %3092 = vst [vmem:[#allocation4 + $0x14] sm:$0xf] %v3089_v13  ;;  %3690 = vmatpush.bf16.msra.mxu0 %v4955_v14  ;;  %4970 = vmatpush.bf16.msra.mxu1 %v4955_v14 }
 0x37b   : > { %v3149_v22 = vsel %vm5380_vm6, %v4554_v15, %v3148_v17  ;;  %v3176_v26 = vshrl.u32 %v3163_v23, 16  ;;  %v3179_v27 = vshll.u32 %v3163_v23, 16  ;;  %v5549_v34 = vld [vmem:[#allocation2 + $0x4] sm:$0xf]  ;;  %v3150_v45 = vrot.slane %v3148_v17, 4 }
 0x37c   : > { %3159 = vst [vmem:[#allocation4 + $0x8] sm:$0xf] %v3149_v22  ;;  %v3110_v30 = vrot.slane %v3108_v20, 5  ;;  %v3114_v31 = vrot.slane %v3112_v21, 4  ;;  %v3220_v46 = vrot.slane %v5549_v34, 6 }
 0x37d   : > { %v3178_v32 = vrot.slane %v3176_v26, 5  ;;  %v3181_v33 = vrot.slane %v3179_v27, 6 }
 0x37e   : > { %v3111_v35 = vsel %vm5390_vm10, %v3106_v29, %v3110_v30  ;;  %v3115_v36 = vor.u32 %v3114_v31, %v3110_v30  ;;  %v3221_v5 = vsel %vm5410_vm14, %v4555_v42, %v3220_v46  ;;  %v3222_v22 = vrot.slane %v3220_v46, 4 }
 0x37f   : > { %3135 = vst [vmem:[#allocation4 + $0x4] sm:$0xf] %v3111_v35  ;;  %v3182_v38 = vor.u32 %v3181_v33, %v3178_v32  ;;  %v3140_v44 = vld [vmem:[#allocation2 + $0x8] sm:$0xf] }
 0x380   : > { %v3096_v40 = vld [vmem:[#allocation2 + $0x8] sm:$0xf]  ;;  %v3151_v47 = vrot.slane %v3140_v44, 5  ;;  %v3116_v48 = vrot.slane %v3115_v36, 4  ;;  %v3097_v0 = vld [vmem:[#allocation2 + $0xc] sm:$0x1] }
 0x381   : > { %v3118_v49 = vshll.u32 %v3096_v40, 16  ;;  %v3164_v51 = vld [vmem:[#allocation2 + $0x8] sm:$0xf]  ;;  %v3183_v52 = vsel %vm5404_vm11, %v3174_v37, %v3182_v38  ;;  %v4920_v53 = vld [vmem:[#allocation4 + $0x10] sm:$0xf0]  ;;  %v3122_v50 = vshrl.u32 %v3096_v40, 16 }
 0x382   : > { %v3186_v54 = vshrl.u32 %v3164_v51, 16  ;;  %v3189_v56 = vshll.u32 %v3164_v51, 16  ;;  %3207 = vst [vmem:[#allocation4 + $0xc] sm:$0xf] %v3183_v52  ;;  %v4559_v57 = vor.u32 %v4920_v53, %v4558_v43  ;;  %v3152_v58 = vsel %vm5380_vm6, %v3150_v45, %v3151_v47  ;;  %v3090_v60 = vld [vmem:[#allocation2 + $0x8] sm:$0xf] }
 0x383   : > { %v3120_v59 = vrot.slane %v3118_v49, 5  ;;  %3160 = vst [vmem:[#allocation4 + $0x1c] sm:$0xf] %v3152_v58  ;;  %v3124_v2 = vrot.slane %v3122_v50, 4  ;;  %v3128_v3 = vshll.u32 %v3097_v0, 16  ;;  %v3184_v7 = vrot.slane %v3182_v38, 4 }
 0x384   : > { %v3188_v61 = vrot.slane %v3186_v54, 5  ;;  %v3191_v62 = vrot.slane %v3189_v56, 6  ;;  %3619 = vmatmul.bf16.vlgmr.msrb.gmra.mxu0 %v4559_v57  ;;  %3093 = vst [vmem:[#allocation4 + $0x28] sm:$0xf] %v3090_v60  ;;  %v3141_v4 = vld [vmem:[#allocation2 + $0xc] sm:$0x1] }
 0x385   : > { %v3121_v1 = vsel %vm5390_vm10, %v3116_v48, %v3120_v59  ;;  %v3153_v9 = vrot.slane %v3151_v47, 4  ;;  %v3154_v10 = vrot.slane %v3141_v4, 5  ;;  %v3125_v11 = vor.u32 %v3124_v2, %v3120_v59  ;;  %v3165_v13 = vld [vmem:[#allocation2 + $0xc] sm:$0x3]  ;;  %v3212_v63 = vld [vmem:[#allocation2 + $0x8] sm:$0xf] }
 0x386   : > { %3136 = vst [vmem:[#allocation4 + $0x18] sm:$0xf] %v3121_v1  ;;  %v3192_v8 = vor.u32 %v3191_v62, %v3188_v61  ;;  %v3196_v17 = vshrl.u32 %v3165_v13, 16  ;;  %v3213_v18 = vld [vmem:[#allocation2 + $0xc] sm:$0x3]  ;;  %v3130_v21 = vrot.slane %v3128_v3, 5 }
 0x387   : > { %v3155_v16 = vsel %vm5380_vm6, %v3153_v9, %v3154_v10  ;;  %3231 = vst [vmem:[#allocation4 + $0x10] sm:$0xf] %v3221_v5  ;;  %v3126_v20 = vrot.slane %v3125_v11, 4  ;;  %v3199_v23 = vshll.u32 %v3165_v13, 16  ;;  %v3223_v25 = vrot.slane %v3212_v63, 6 }
 0x388   : > { %v3193_v15 = vsel %vm5404_vm11, %v3184_v7, %v3192_v8  ;;  %3161 = vst [vmem:[#allocation4 + $0x30] sm:$0xf] %v3155_v16  ;;  %v3198_v24 = vrot.slane %v3196_v17, 5  ;;  %v3226_v26 = vrot.slane %v3213_v18, 6  ;;  %v4566_v27 = vld [vmem:[#allocation4 + $0x8] sm:$0xf] }
 0x389   : > { %3208 = vst [vmem:[#allocation4 + $0x20] sm:$0xf] %v3193_v15  ;;  %v3131_v41 = vsel %vm5390_vm10, %v3126_v20, %v3130_v21  ;;  %v3194_v30 = vrot.slane %v3192_v8, 4  ;;  %v3201_v31 = vrot.slane %v3199_v23, 6  ;;  %v3224_v32 = vsel %vm5410_vm14, %v3222_v22, %v3223_v25  ;;  %v4918_v34 = vld [vmem:[#allocation4 + $0x4] sm:$0xf] }
 0x38a   : > { %v4921_v29 = vld [vmem:[#allocation4 + $0x18] sm:$0xf0]  ;;  %3137 = vst [vmem:[#allocation4 + $0x2c] sm:$0xf] %v3131_v41  ;;  %v3225_v33 = vrot.slane %v3223_v25, 4 }
 0x38b   : > { %v4567_v19 = vor.u32 %v4921_v29, %v4566_v27  ;;  %v3202_v36 = vor.u32 %v3201_v31, %v3198_v24  ;;  %3232 = vst [vmem:[#allocation4 + $0x24] sm:$0xf] %v3224_v32  ;;  %v4919_v42 = vld [vmem:[#allocation4 + $0xc] sm:$0xf]  ;;  %v5039_v2 = vld [vmem:[%s5603_s10] ss:$0 sm:$0xff] }
 0x38c   : > { %v3227_v12 = vsel %vm5410_vm14, %v3225_v33, %v3226_v26 }
 0x38d   : > { %v4560_v35 = vld [vmem:[#allocation4 + $0x14] sm:$0xf0]  ;;  %3655 = vmatmul.bf16.vlgmr.msrb.gmra.mxu2 %v4567_v19  ;;  %v3203_v38 = vsel %vm5404_vm11, %v3194_v30, %v3202_v36  ;;  %3233 = vst [vmem:[#allocation4 + $0x38] sm:$0xf] %v3227_v12 }
 0x38e   : > { %v4563_v37 = vor.u32 %v4918_v34, %v4560_v35  ;;  %3209 = vst [vmem:[#allocation4 + $0x34] sm:$0xf] %v3203_v38  ;;  %v4574_v53 = vld [vmem:[#allocation4 + $0x10] sm:$0xf] }
 0x390   : > { %3637 = vmatmul.bf16.vlgmr.msrb.gmra.mxu1 %v4563_v37  ;;  %v4568_v28 = vld [vmem:[#allocation4 + $0x1c] sm:$0xf0] }
 0x391   : > { %v4571_v43 = vor.u32 %v4919_v42, %v4568_v28  ;;  %v3240_v44 = vld [vmem:[#allocation4 + $0x28] sm:$0xff] }
 0x392   : > { %v3346_v45 = vunpack.c.l.b16 %v3240_v44  ;;  %v3347_v47 = vunpack.c.h.b16 %v3240_v44  ;;  %v4922_v52 = vld [vmem:[#allocation4 + $0x20] sm:$0xf0] }
 0x393   : > { %3673 = vmatmul.bf16.vlgmr.msrb.gmra.mxu3 %v4571_v43  ;;  %v4575_v54 = vor.u32 %v4922_v52, %v4574_v53 }
 0x394   : > { %v3356_v40 = vpack.c.b16 %v3346_v45, %v3346_v45  ;;  %v3357_v49 = vpack.c.b16 %v3347_v47, %v3347_v47  ;;  %v3242_v39 = vld [vmem:[#allocation4 + $0x38] sm:$0xf] }
 0x395   : > { %v3241_v46 = vld [vmem:[#allocation4 + $0x30] sm:$0xff]  ;;  %v3350_v56 = vunpack.c.l.b16 %v3242_v39 }
 0x396   : > { %3624 = vmatmul.bf16.gmra.mxu0 %v3356_v40  ;;  %v3348_v6 = vunpack.c.l.b16 %v3241_v46  ;;  %v3349_v55 = vunpack.c.h.b16 %v3241_v46 }
 0x397   : > { %v3360_v57 = vpack.c.b16 %v3350_v56, %v3350_v56 }
 0x398   : > { %v3358_v48 = vpack.c.b16 %v3348_v6, %v3348_v6  ;;  %v3359_v51 = vpack.c.b16 %v3349_v55, %v3349_v55 }
 0x39d   : > { %3660 = vmatmul.bf16.gmra.mxu2 %v3358_v48 }
 0x3a0   : > { %3642 = vmatmul.bf16.gmra.mxu1 %v3357_v49 }
 0x3a3   : > { %3678 = vmatmul.bf16.gmra.mxu3 %v3359_v51 }
 0x3a6   : > { %3691 = vmatmul.bf16.vlgmr.msra.gmra.mxu0 %v4575_v54 }
 0x3b0   : > { %3696 = vmatmul.bf16.vlgmr.msra.gmra.mxu1 %v3360_v57 }
 0x401   : > { %v3620_v58 = vpop.f32.mrf.mxu0 }
 0x402   : > { %v3621_v5 = vadd.f32 %v5039_v2, %v3620_v58 }
 0x409   : > { %v3622_v59 = vpop.f32.mrf.mxu0 }
 0x40a   : > { %v3623_v63 = vadd.f32 %v5039_v2, %v3622_v59 }
 0x40d   : > { %v3638_v60 = vpop.f32.mrf.mxu1 }
 0x40e   : > { %v3639_v8 = vadd.f32 %v3638_v60, %v3621_v5 }
 0x410   : > { %v3656_v50 = vpop.f32.mrf.mxu2 }
 0x411   : > { %v3657_v10 = vadd.f32 %v3656_v50, %v3639_v8 }
 0x413   : > { %v3625_v61 = vpop.f32.mrf.mxu0 }
 0x414   : > { %v3626_v15 = vadd.f32 %v5039_v2, %v3625_v61 }
 0x415   : > { %v3640_v62 = vpop.f32.mrf.mxu1 }
 0x416   : > { %v3674_v0 = vpop.f32.mrf.mxu3  ;;  %v3641_v18 = vadd.f32 %v3640_v62, %v3623_v63 }
 0x417   : > { %v3675_v11 = vadd.f32 %v3674_v0, %v3657_v10 }
 0x418   : > { %v3658_v1 = vpop.f32.mrf.mxu2 }
 0x419   : > { %v3659_v23 = vadd.f32 %v3658_v1, %v3641_v18 }
 0x41b   : > { %v3627_v3 = vpop.f32.mrf.mxu0 }
 0x41d   : > { %v3643_v4 = vpop.f32.mrf.mxu1 }
 0x41e   : > { %v3676_v7 = vpop.f32.mrf.mxu3  ;;  %v3644_v20 = vadd.f32 %v3643_v4, %v3626_v15 }
 0x41f   : > { %v3677_v22 = vadd.f32 %v3676_v7, %v3659_v23 }
 0x420   : > { %v3661_v9 = vpop.f32.mrf.mxu2 }
 0x421   : > { %v3662_v24 = vadd.f32 %v3661_v9, %v3644_v20 }
 0x423   : > { %v3692_v13 = vpop.f32.mrf.mxu0 }
 0x424   : > { %v3693_v16 = vadd.f32 %v3692_v13, %v3675_v11 }
 0x425   : > { %v3645_v14 = vpop.f32.mrf.mxu1 }
 0x426   : > { %v3679_v17 = vpop.f32.mrf.mxu3  ;;  %3701 = vst [vmem:[%s469_s27] sm:$0xff] %v3693_v16 }
 0x427   : > { %v3680_v25 = vadd.f32 %v3679_v17, %v3662_v24 }
 0x428   : > { %v3663_v21 = vpop.f32.mrf.mxu2 }
 0x42b   : > { %v3694_v26 = vpop.f32.mrf.mxu0 }
 0x42c   : > { %v3695_v29 = vadd.f32 %v3694_v26, %v3677_v22 }
 0x42d   : > { %v3697_v27 = vpop.f32.mrf.mxu1 }
 0x42e   : > { %v3681_v41 = vpop.f32.mrf.mxu3  ;;  %v3698_v30 = vadd.f32 %v3697_v27, %v3680_v25  ;;  %3702 = vst [vmem:[%s469_s27 + $0x8] sm:$0xff] %v3695_v29 }
 0x430   : > { %3703 = vst [vmem:[%s469_s27 + $0x10] sm:$0xff] %v3698_v30 }
 0x435   : > { %v3699_v31 = vpop.f32.mrf.mxu1 }
 0x436 PF: > { %s24_s17 = sadd.s32 1, %s5232_s17  }
 0x437   : > { %p21_p7 = scmp.ge.s32.totalorder %s24_s17, 4  }
 0x439   :  { %23 = sbr.rel (!%p21_p7) target bundleno = 5 (0x5), region = 115 }
 0x43e   :  { %3725 = vsyncpa [#allocation6], 1 }
 0x43f   :  { %3727 = vsyncpa [#allocation6 + $0x1], 1 }
 0x440   :  { %3728 = vsyncpa [#allocation8], 1 }
 0x441   :  { %3729 = vsyncpa [#allocation11], 1 }

</bundles_post_ra>
